<compile_context>
chip_gen: v7x
topology: tpu7x:2x2x1
jax: 0.10.0
libtpu: 0.0.40
codegen_flags: <defaults>
</compile_context>

<pallas_src>
import functools

import jax
import jax.numpy as jnp
from jax import lax
from jax.experimental import pallas as pl
from jax.experimental.pallas import tpu as pltpu


def _round_up(x, m):
    return (x + m - 1) // m * m


def _supcon_kernel(feat_row_ref, feat_col_ref, lab_row_ref, lab_col_ref,
                   out_ref, m_sc, l_sc, pcnt_sc, psim_sc,
                   *, inv_temp, loss_scale, n_valid):
    """One (row-tile i, col-tile j) step of the online-LSE SupCon forward."""
    i = pl.program_id(0)
    j = pl.program_id(1)
    tm = feat_row_ref.shape[0]
    tn = feat_col_ref.shape[0]

    @pl.when(j == 0)
    def _():
        m_sc[...] = jnp.full_like(m_sc, -1e30)
        l_sc[...] = jnp.zeros_like(l_sc)
        pcnt_sc[...] = jnp.zeros_like(pcnt_sc)
        psim_sc[...] = jnp.zeros_like(psim_sc)

    # bf16 x bf16 -> f32 MXU matmul, contracting the last dims (no .T materialized).
    sims = lax.dot_general(
        feat_row_ref[...], feat_col_ref[...],
        dimension_numbers=(((1,), (1,)), ((), ())),
        preferred_element_type=jnp.float32)              # [TM, TN]
    if inv_temp != 1.0:
        sims = sims * jnp.float32(inv_temp)

    # Masks rebuilt per tile (no N x N mask traffic from HBM).
    row_idx = i * tm + lax.broadcasted_iota(jnp.int32, (tm, tn), 0)
    col_idx = j * tn + lax.broadcasted_iota(jnp.int32, (tm, tn), 1)
    allowed = jnp.logical_and(col_idx < n_valid, row_idx != col_idx)
    pos = jnp.logical_and(lab_row_ref[...] == lab_col_ref[...], allowed)

    # Online (flash-style) log-sum-exp over allowed columns.
    m_prev = m_sc[...]
    tile_max = jnp.max(jnp.where(allowed, sims, -1e30), axis=1, keepdims=True)
    m_new = jnp.maximum(m_prev, tile_max)
    alpha = jnp.exp(m_prev - m_new)
    p = jnp.where(allowed, jnp.exp(sims - m_new), 0.0)
    l_sc[...] = alpha * l_sc[...] + jnp.sum(p, axis=1, keepdims=True)
    m_sc[...] = m_new

    # Running positive-pair count and positive-weighted sims sum.
    pos_f = pos.astype(jnp.float32)
    pcnt_sc[...] = pcnt_sc[...] + jnp.sum(pos_f, axis=1, keepdims=True)
    psim_sc[...] = psim_sc[...] + jnp.sum(jnp.where(pos, sims, 0.0), axis=1,
                                          keepdims=True)

    @pl.when(j == pl.num_programs(1) - 1)
    def _():
        lse = m_sc[...] + jnp.log(l_sc[...])             # [TM, 1]
        # sum(pos*log_prob) = sum(pos*sims) - sum(pos)*LSE   (no [N,N] log_prob)
        num = psim_sc[...] - pcnt_sc[...] * lse + 1e-05
        den = pcnt_sc[...] + 1e-05
        per_anchor = jnp.float32(loss_scale) * (num / den)
        row_valid = (i * tm + lax.broadcasted_iota(jnp.int32, (tm, 1), 0)) < n_valid
        out_ref[...] = jnp.where(row_valid, per_anchor, 0.0)


def supcon_loss(features, labels=None, mask=None, dist=None, norm_val=0.2,
                scale_s=150, *, temperature=1.0, base_temperature=1.0,
                contrast_mode='all'):
    """Pallas implementation of SupConLoss.forward (contrast_mode='all').

    `dist`, `norm_val`, `scale_s` are accepted for signature parity with the
    PyTorch module but (as in the reference forward) are unused.
    """
    del dist, norm_val, scale_s
    if features.ndim < 3:
        raise ValueError('`features` needs to be [bsz, n_views, ...]')
    if features.ndim > 3:
        features = features.reshape(features.shape[0], features.shape[1], -1)
    if contrast_mode != 'all':
        # TODO(synk): contrast_mode='one' (anchor = view 0 only) not implemented.
        raise ValueError('only contrast_mode="all" is supported')

    bsz, n_views, dim = features.shape

    if labels is not None and mask is not None:
        raise ValueError('Cannot define both `labels` and `mask`')
    if mask is not None:
        # TODO(synk): explicit (possibly asymmetric) [bsz,bsz] mask input is not
        # supported by the label-based tiled kernel; use `labels` or None.
        raise NotImplementedError('explicit `mask` not supported; pass labels')
    if labels is None:
        labels = jnp.arange(bsz, dtype=jnp.int32)        # SimCLR: mask = eye(bsz)
    labels = jnp.asarray(labels).reshape(-1).astype(jnp.int32)
    if labels.shape[0] != bsz:
        raise ValueError('Num of labels does not match num of features')

    n = n_views * bsz                                    # number of anchors
    tile = min(512, _round_up(n, 128))                   # (8,128)-aligned tiles
    n_pad = _round_up(n, tile)
    d_pad = _round_up(max(dim, 1), 128)                  # fill MXU K dimension

    # torch.cat(torch.unbind(features, dim=1), dim=0) -> view-major [N, D]
    cf = jnp.transpose(features, (1, 0, 2)).reshape(n, dim).astype(jnp.float32)
    feat = jnp.zeros((n_pad, d_pad), jnp.bfloat16).at[:n, :dim].set(
        cf.astype(jnp.bfloat16))

    lab_full = jnp.tile(labels, n_views)                 # view-major labels [N]
    lab_pad = jnp.full((n_pad,), -1, jnp.int32).at[:n].set(lab_full)
    lab_row = lab_pad.reshape(n_pad, 1)
    lab_col = lab_pad.reshape(1, n_pad)

    grid = (n_pad // tile, n_pad // tile)
    kernel = functools.partial(
        _supcon_kernel,
        inv_temp=float(1.0 / temperature),
        loss_scale=-(float(temperature) / float(base_temperature)),
        n_valid=n)

    per_anchor = pl.pallas_call(
        kernel,
        out_shape=jax.ShapeDtypeStruct((n_pad, 1), jnp.float32),
        grid_spec=pltpu.PrefetchScalarGridSpec(
            num_scalar_prefetch=0,
            grid=grid,
            in_specs=[
                pl.BlockSpec((tile, d_pad), lambda i, j: (i, 0)),   # anchor rows
                pl.BlockSpec((tile, d_pad), lambda i, j: (j, 0)),   # contrast cols
                pl.BlockSpec((tile, 1), lambda i, j: (i, 0)),       # row labels
                pl.BlockSpec((1, tile), lambda i, j: (0, j)),       # col labels
            ],
            out_specs=pl.BlockSpec((tile, 1), lambda i, j: (i, 0)),
            scratch_shapes=[pltpu.VMEM((tile, 1), jnp.float32)] * 4,
        ),
        compiler_params=pltpu.CompilerParams(
            dimension_semantics=("parallel", "arbitrary"),
            vmem_limit_bytes=32 * 1024 * 1024),
        cost_estimate=pl.CostEstimate(
            flops=2 * n_pad * n_pad * d_pad,
            transcendentals=n_pad * n_pad,
            bytes_accessed=2 * n_pad * d_pad * 2 * (n_pad // tile) + 8 * n_pad),
    )(feat, feat, lab_row, lab_col)

    # .view(anchor_count, batch_size).mean() == mean over all N anchors.
    return jnp.sum(per_anchor) / jnp.float32(n)


def _reference_supcon(features, labels=None, temperature=1.0, base_temperature=1.0):
    """Pure-JAX f32 reference mirroring the PyTorch forward (sanity check)."""
    bsz, n_views, dim = features.shape
    if labels is None:
        mask = jnp.eye(bsz, dtype=jnp.float32)
    else:
        labels = labels.reshape(-1, 1)
        mask = (labels == labels.T).astype(jnp.float32)
    cf = jnp.transpose(features, (1, 0, 2)).reshape(n_views * bsz, dim)
    adc = (cf @ cf.T) / temperature
    mask = jnp.tile(mask, (n_views, n_views))
    logits = adc - jnp.max(adc, axis=1, keepdims=True)
    n = n_views * bsz
    logits_mask = 1.0 - jnp.eye(n, dtype=jnp.float32)
    mask = mask * logits_mask
    exp_logits = jnp.exp(logits) * logits_mask
    log_prob = logits - jnp.log(jnp.sum(exp_logits, axis=1, keepdims=True))
    mlpp = (jnp.sum(mask * log_prob, axis=1) + 1e-05) / (jnp.sum(mask, axis=1) + 1e-05)
    return jnp.mean(-(temperature / base_temperature) * mlpp)


if __name__ == "__main__":
    key = jax.random.PRNGKey(0)
    k_feat, k_lab = jax.random.split(key)

    bsz, n_views, dim = 8, 2, 32
    features = jax.random.normal(k_feat, (bsz, n_views, dim), dtype=jnp.float32)
    # L2-normalize as is customary for SupCon inputs.
    features = features / jnp.linalg.norm(features, axis=-1, keepdims=True)
    labels = jax.random.randint(k_lab, (bsz,), 0, 3)

    # Supervised path (labels).
    loss = supcon_loss(features, labels=labels, temperature=1.0, base_temperature=1.0)
    loss = jax.block_until_ready(loss)
    ref = _reference_supcon(features, labels)
    assert jnp.allclose(loss, ref, atol=2e-2, rtol=2e-2), (loss, ref)

    # Unsupervised (SimCLR) path: labels=None, mask=None -> eye mask.
    loss_u = supcon_loss(features, temperature=1.0, base_temperature=1.0)
    loss_u = jax.block_until_ready(loss_u)
    ref_u = _reference_supcon(features, None)
    assert jnp.allclose(loss_u, ref_u, atol=2e-2, rtol=2e-2), (loss_u, ref_u)

    print("KERNEL_OK")
</pallas_src>

<mosaic_0001>
module attributes {stable_mosaic.version = 11 : i64} {
  func.func @_supcon_kernel(%arg0: i32, %arg1: i32, %arg2: memref<128x128xbf16, #tpu.memory_space<vmem>>, %arg3: memref<128x128xbf16, #tpu.memory_space<vmem>>, %arg4: memref<128x1xi32, #tpu.memory_space<vmem>>, %arg5: memref<1x128xi32, #tpu.memory_space<vmem>>, %arg6: memref<128x1xf32, #tpu.memory_space<vmem>>, %arg7: memref<128x1xf32, #tpu.memory_space<vmem>>, %arg8: memref<128x1xf32, #tpu.memory_space<vmem>>, %arg9: memref<128x1xf32, #tpu.memory_space<vmem>>, %arg10: memref<128x1xf32, #tpu.memory_space<vmem>>) attributes {dimension_semantics = [#tpu.dimension_semantics<parallel>, #tpu.dimension_semantics<arbitrary>], iteration_bounds = array<i64: 1, 1>, scalar_prefetch = 0 : i64, scratch_operands = 4 : i64, tpu.core_type = #tpu.core_type<tc>, window_params = [{transform_indices = @transform_0, window_bounds = array<i64: 128, 128>}, {transform_indices = @transform_1, window_bounds = array<i64: 128, 128>}, {transform_indices = @transform_2, window_bounds = array<i64: 128, 1>}, {transform_indices = @transform_3, window_bounds = array<i64: 1, 128>}, {transform_indices = @transform_4, window_bounds = array<i64: 128, 1>}]} {
    %c0_i32 = arith.constant 0 : i32
    %0 = arith.cmpi eq, %arg1, %c0_i32 : i32
    %1 = arith.extui %0 : i1 to i32
    %c0_i32_0 = arith.constant 0 : i32
    %2 = arith.cmpi ne, %1, %c0_i32_0 : i32
    scf.if %2 {
      %cst_34 = arith.constant -1.000000e+30 : f32
      %61 = vector.broadcast %cst_34 : f32 to vector<128x1xf32>
      %c0_35 = arith.constant 0 : index
      %c0_36 = arith.constant 0 : index
      %62 = vector.load %arg7[%c0_35, %c0_36] : memref<128x1xf32, #tpu.memory_space<vmem>>, vector<128x1xf32>
      tpu.vector_store %arg7[%c0_35, %c0_36], %61 {strides = array<i32>} : memref<128x1xf32, #tpu.memory_space<vmem>>, vector<128x1xf32>,
      %cst_37 = arith.constant 0.000000e+00 : f32
      %63 = vector.broadcast %cst_37 : f32 to vector<128x1xf32>
      %c0_38 = arith.constant 0 : index
      %c0_39 = arith.constant 0 : index
      %64 = vector.load %arg8[%c0_38, %c0_39] : memref<128x1xf32, #tpu.memory_space<vmem>>, vector<128x1xf32>
      tpu.vector_store %arg8[%c0_38, %c0_39], %63 {strides = array<i32>} : memref<128x1xf32, #tpu.memory_space<vmem>>, vector<128x1xf32>,
      %cst_40 = arith.constant 0.000000e+00 : f32
      %65 = vector.broadcast %cst_40 : f32 to vector<128x1xf32>
      %c0_41 = arith.constant 0 : index
      %c0_42 = arith.constant 0 : index
      %66 = vector.load %arg9[%c0_41, %c0_42] : memref<128x1xf32, #tpu.memory_space<vmem>>, vector<128x1xf32>
      tpu.vector_store %arg9[%c0_41, %c0_42], %65 {strides = array<i32>} : memref<128x1xf32, #tpu.memory_space<vmem>>, vector<128x1xf32>,
      %cst_43 = arith.constant 0.000000e+00 : f32
      %67 = vector.broadcast %cst_43 : f32 to vector<128x1xf32>
      %c0_44 = arith.constant 0 : index
      %c0_45 = arith.constant 0 : index
      %68 = vector.load %arg10[%c0_44, %c0_45] : memref<128x1xf32, #tpu.memory_space<vmem>>, vector<128x1xf32>
      tpu.vector_store %arg10[%c0_44, %c0_45], %67 {strides = array<i32>} : memref<128x1xf32, #tpu.memory_space<vmem>>, vector<128x1xf32>,
    } else {
    }
    %c0 = arith.constant 0 : index
    %c0_1 = arith.constant 0 : index
    %3 = vector.load %arg2[%c0, %c0_1] : memref<128x128xbf16, #tpu.memory_space<vmem>>, vector<128x128xbf16>
    %c0_2 = arith.constant 0 : index
    %c0_3 = arith.constant 0 : index
    %4 = vector.load %arg3[%c0_2, %c0_3] : memref<128x128xbf16, #tpu.memory_space<vmem>>, vector<128x128xbf16>
    %cst = arith.constant dense<0.000000e+00> : vector<128x128xf32>
    %5 = tpu.matmul %3, %4, %cst {dimension_numbers = #tpu.dot_dimension_numbers<[1], [1], [0], [0], [0, 0, 1, 0], [], []>} : vector<128x128xbf16>, vector<128x128xbf16>, vector<128x128xf32> -> vector<128x128xf32>
    %c128_i32 = arith.constant 128 : i32
    %6 = arith.muli %arg0, %c128_i32 : i32
    %7 = tpu.iota {dimensions = array<i32: 0>} : vector<128x128xi32>
    %8 = vector.broadcast %6 : i32 to vector<128x128xi32>
    %9 = arith.addi %8, %7 : vector<128x128xi32>
    %c128_i32_4 = arith.constant 128 : i32
    %10 = arith.muli %arg1, %c128_i32_4 : i32
    %11 = tpu.iota {dimensions = array<i32: 1>} : vector<128x128xi32>
    %12 = vector.broadcast %10 : i32 to vector<128x128xi32>
    %13 = arith.addi %12, %11 : vector<128x128xi32>
    %c16_i32 = arith.constant 16 : i32
    %14 = vector.broadcast %c16_i32 : i32 to vector<128x128xi32>
    %15 = arith.cmpi slt, %13, %14 : vector<128x128xi32>
    %16 = arith.cmpi ne, %9, %13 : vector<128x128xi32>
    %17 = arith.andi %15, %16 : vector<128x128xi1>
    %c0_5 = arith.constant 0 : index
    %c0_6 = arith.constant 0 : index
    %18 = vector.load %arg4[%c0_5, %c0_6] : memref<128x1xi32, #tpu.memory_space<vmem>>, vector<128x1xi32>
    %c0_7 = arith.constant 0 : index
    %c0_8 = arith.constant 0 : index
    %19 = vector.load %arg5[%c0_7, %c0_8] : memref<1x128xi32, #tpu.memory_space<vmem>>, vector<1x128xi32>
    %20 = vector.broadcast %18 : vector<128x1xi32> to vector<128x128xi32>
    %21 = vector.broadcast %19 : vector<1x128xi32> to vector<128x128xi32>
    %22 = arith.cmpi eq, %20, %21 : vector<128x128xi32>
    %23 = arith.andi %22, %17 : vector<128x128xi1>
    %c0_9 = arith.constant 0 : index
    %c0_10 = arith.constant 0 : index
    %24 = vector.load %arg7[%c0_9, %c0_10] : memref<128x1xf32, #tpu.memory_space<vmem>>, vector<128x1xf32>
    %cst_11 = arith.constant -1.000000e+30 : f32
    %25 = vector.broadcast %cst_11 : f32 to vector<128x128xf32>
    %26 = arith.select %17, %5, %25 : vector<128x128xi1>, vector<128x128xf32>
    %cst_12 = arith.constant dense<0xFF800000> : vector<128xf32>
    %27 = vector.multi_reduction <maximumf>, %26, %cst_12 [1] : vector<128x128xf32> to vector<128xf32>
    %28 = vector.shape_cast %27 : vector<128xf32> to vector<128x1xf32>
    %29 = arith.maximumf %24, %28 : vector<128x1xf32>
    %30 = arith.subf %24, %29 : vector<128x1xf32>
    %31 = math.exp %30 : vector<128x1xf32>
    %32 = vector.broadcast %29 : vector<128x1xf32> to vector<128x128xf32>
    %33 = arith.subf %5, %32 : vector<128x128xf32>
    %34 = math.exp %33 : vector<128x128xf32>
    %cst_13 = arith.constant 0.000000e+00 : f32
    %35 = vector.broadcast %cst_13 : f32 to vector<128x128xf32>
    %36 = arith.select %17, %34, %35 : vector<128x128xi1>, vector<128x128xf32>
    %c0_14 = arith.constant 0 : index
    %c0_15 = arith.constant 0 : index
    %37 = vector.load %arg8[%c0_14, %c0_15] : memref<128x1xf32, #tpu.memory_space<vmem>>, vector<128x1xf32>
    %38 = arith.mulf %31, %37 : vector<128x1xf32>
    %cst_16 = arith.constant dense<0.000000e+00> : vector<128xf32>
    %39 = vector.multi_reduction <add>, %36, %cst_16 [1] : vector<128x128xf32> to vector<128xf32>
    %40 = vector.shape_cast %39 : vector<128xf32> to vector<128x1xf32>
    %41 = arith.addf %38, %40 : vector<128x1xf32>
    %c0_17 = arith.constant 0 : index
    %c0_18 = arith.constant 0 : index
    %42 = vector.load %arg8[%c0_17, %c0_18] : memref<128x1xf32, #tpu.memory_space<vmem>>, vector<128x1xf32>
    tpu.vector_store %arg8[%c0_17, %c0_18], %41 {strides = array<i32>} : memref<128x1xf32, #tpu.memory_space<vmem>>, vector<128x1xf32>,
    %c0_19 = arith.constant 0 : index
    %c0_20 = arith.constant 0 : index
    %43 = vector.load %arg7[%c0_19, %c0_20] : memref<128x1xf32, #tpu.memory_space<vmem>>, vector<128x1xf32>
    tpu.vector_store %arg7[%c0_19, %c0_20], %29 {strides = array<i32>} : memref<128x1xf32, #tpu.memory_space<vmem>>, vector<128x1xf32>,
    %44 = arith.extui %23 : vector<128x128xi1> to vector<128x128xi32>
    %45 = arith.sitofp %44 : vector<128x128xi32> to vector<128x128xf32>
    %c0_21 = arith.constant 0 : index
    %c0_22 = arith.constant 0 : index
    %46 = vector.load %arg9[%c0_21, %c0_22] : memref<128x1xf32, #tpu.memory_space<vmem>>, vector<128x1xf32>
    %cst_23 = arith.constant dense<0.000000e+00> : vector<128xf32>
    %47 = vector.multi_reduction <add>, %45, %cst_23 [1] : vector<128x128xf32> to vector<128xf32>
    %48 = vector.shape_cast %47 : vector<128xf32> to vector<128x1xf32>
    %49 = arith.addf %46, %48 : vector<128x1xf32>
    %c0_24 = arith.constant 0 : index
    %c0_25 = arith.constant 0 : index
    %50 = vector.load %arg9[%c0_24, %c0_25] : memref<128x1xf32, #tpu.memory_space<vmem>>, vector<128x1xf32>
    tpu.vector_store %arg9[%c0_24, %c0_25], %49 {strides = array<i32>} : memref<128x1xf32, #tpu.memory_space<vmem>>, vector<128x1xf32>,
    %c0_26 = arith.constant 0 : index
    %c0_27 = arith.constant 0 : index
    %51 = vector.load %arg10[%c0_26, %c0_27] : memref<128x1xf32, #tpu.memory_space<vmem>>, vector<128x1xf32>
    %cst_28 = arith.constant 0.000000e+00 : f32
    %52 = vector.broadcast %cst_28 : f32 to vector<128x128xf32>
    %53 = arith.select %23, %5, %52 : vector<128x128xi1>, vector<128x128xf32>
    %cst_29 = arith.constant dense<0.000000e+00> : vector<128xf32>
    %54 = vector.multi_reduction <add>, %53, %cst_29 [1] : vector<128x128xf32> to vector<128xf32>
    %55 = vector.shape_cast %54 : vector<128xf32> to vector<128x1xf32>
    %56 = arith.addf %51, %55 : vector<128x1xf32>
    %c0_30 = arith.constant 0 : index
    %c0_31 = arith.constant 0 : index
    %57 = vector.load %arg10[%c0_30, %c0_31] : memref<128x1xf32, #tpu.memory_space<vmem>>, vector<128x1xf32>
    tpu.vector_store %arg10[%c0_30, %c0_31], %56 {strides = array<i32>} : memref<128x1xf32, #tpu.memory_space<vmem>>, vector<128x1xf32>,
    %c0_i32_32 = arith.constant 0 : i32
    %58 = arith.cmpi eq, %arg1, %c0_i32_32 : i32
    %59 = arith.extui %58 : i1 to i32
    %c0_i32_33 = arith.constant 0 : i32
    %60 = arith.cmpi ne, %59, %c0_i32_33 : i32
    scf.if %60 {
      %c0_34 = arith.constant 0 : index
      %c0_35 = arith.constant 0 : index
      %61 = vector.load %arg7[%c0_34, %c0_35] : memref<128x1xf32, #tpu.memory_space<vmem>>, vector<128x1xf32>
      %c0_36 = arith.constant 0 : index
      %c0_37 = arith.constant 0 : index
      %62 = vector.load %arg8[%c0_36, %c0_37] : memref<128x1xf32, #tpu.memory_space<vmem>>, vector<128x1xf32>
      %63 = math.log %62 : vector<128x1xf32>
      %64 = arith.addf %61, %63 : vector<128x1xf32>
      %c0_38 = arith.constant 0 : index
      %c0_39 = arith.constant 0 : index
      %65 = vector.load %arg10[%c0_38, %c0_39] : memref<128x1xf32, #tpu.memory_space<vmem>>, vector<128x1xf32>
      %c0_40 = arith.constant 0 : index
      %c0_41 = arith.constant 0 : index
      %66 = vector.load %arg9[%c0_40, %c0_41] : memref<128x1xf32, #tpu.memory_space<vmem>>, vector<128x1xf32>
      %67 = arith.mulf %66, %64 : vector<128x1xf32>
      %68 = arith.subf %65, %67 : vector<128x1xf32>
      %cst_42 = arith.constant 9.99999974E-6 : f32
      %69 = vector.broadcast %cst_42 : f32 to vector<128x1xf32>
      %70 = arith.addf %68, %69 : vector<128x1xf32>
      %c0_43 = arith.constant 0 : index
      %c0_44 = arith.constant 0 : index
      %71 = vector.load %arg9[%c0_43, %c0_44] : memref<128x1xf32, #tpu.memory_space<vmem>>, vector<128x1xf32>
      %cst_45 = arith.constant 9.99999974E-6 : f32
      %72 = vector.broadcast %cst_45 : f32 to vector<128x1xf32>
      %73 = arith.addf %71, %72 : vector<128x1xf32>
      %74 = arith.divf %70, %73 : vector<128x1xf32>
      %cst_46 = arith.constant -1.000000e+00 : f32
      %75 = vector.broadcast %cst_46 : f32 to vector<128x1xf32>
      %76 = arith.mulf %75, %74 : vector<128x1xf32>
      %c128_i32_47 = arith.constant 128 : i32
      %77 = arith.muli %arg0, %c128_i32_47 : i32
      %78 = tpu.iota {dimensions = array<i32: 0>} : vector<128x1xi32>
      %79 = vector.broadcast %77 : i32 to vector<128x1xi32>
      %80 = arith.addi %79, %78 : vector<128x1xi32>
      %c16_i32_48 = arith.constant 16 : i32
      %81 = vector.broadcast %c16_i32_48 : i32 to vector<128x1xi32>
      %82 = arith.cmpi slt, %80, %81 : vector<128x1xi32>
      %cst_49 = arith.constant 0.000000e+00 : f32
      %83 = vector.broadcast %cst_49 : f32 to vector<128x1xf32>
      %84 = arith.select %82, %76, %83 : vector<128x1xi1>, vector<128x1xf32>
      %c0_50 = arith.constant 0 : index
      %c0_51 = arith.constant 0 : index
      %85 = vector.load %arg6[%c0_50, %c0_51] : memref<128x1xf32, #tpu.memory_space<vmem>>, vector<128x1xf32>
      tpu.vector_store %arg6[%c0_50, %c0_51], %84 {strides = array<i32>} : memref<128x1xf32, #tpu.memory_space<vmem>>, vector<128x1xf32>,
    } else {
    }
    return
  }
  func.func @transform_0(%arg0: i32, %arg1: i32) -> (i32, i32) {
    %c0_i32 = arith.constant 0 : i32
    %c0_i32_0 = arith.constant 0 : i32
    return %arg0, %c0_i32 : i32, i32
  }
  func.func @transform_1(%arg0: i32, %arg1: i32) -> (i32, i32) {
    %c0_i32 = arith.constant 0 : i32
    %c0_i32_0 = arith.constant 0 : i32
    return %arg1, %c0_i32 : i32, i32
  }
  func.func @transform_2(%arg0: i32, %arg1: i32) -> (i32, i32) {
    %c0_i32 = arith.constant 0 : i32
    %c0_i32_0 = arith.constant 0 : i32
    return %arg0, %c0_i32 : i32, i32
  }
  func.func @transform_3(%arg0: i32, %arg1: i32) -> (i32, i32) {
    %c0_i32 = arith.constant 0 : i32
    %c0_i32_0 = arith.constant 0 : i32
    return %c0_i32, %arg1 : i32, i32
  }
  func.func @transform_4(%arg0: i32, %arg1: i32) -> (i32, i32) {
    %c0_i32 = arith.constant 0 : i32
    %c0_i32_0 = arith.constant 0 : i32
    return %arg0, %c0_i32 : i32, i32
  }
}

</mosaic_0001>

<bundles_post_ra>
// kernel: tpu_custom_call.1
= control target key start
LH: loop header
LB: loop body
LE: loop exit
PB: predicated region body
PF: predicated region fallthrough
CT: control target
= control target key end

     0   :  { %v1548_v1 = vmov 0   ;;  %v313_v30 = vlaneseq  ;;  %v2656_v41 = vmov 0  ;;  %v2628_v46 = vmov 0.0   ;;  %s2602_s1 = inlined_call_operand.vmem [shape: bf16[128,128], index: 1, kind: input, shape index: {}]   ;;  %s2603_s0 = inlined_call_operand.vmem [shape: bf16[128,128], index: 0, kind: input, shape index: {}]   ;;  %s2604_s2 = inlined_call_operand.vmem [shape: s32[128,1], index: 2, kind: input, shape index: {}]   ;;  %s2605_s3 = inlined_call_operand.vmem [shape: s32[1,128], index: 3, kind: input, shape index: {}]   ;;  %s2606_s4 = inlined_call_operand.vmem [shape: f32[128,1], index: 4, kind: output, shape index: {}]  }
   0x1   :  { %v1460_v0 = vld [vmem:[%s2602_s1] sm:$0xff]   ;;  %1458 = vset.pattern.permute.xlu0 %v1548_v1  ;;  %1459 = vset.pattern.permute.xlu1 %v1548_v1  ;;  %v1461_v2 = vld [vmem:[%s2602_s1 + $0x8] sm:$0xff]   ;;  %v1462_v3 = vld [vmem:[%s2602_s1 + $0x10] sm:$0xff]   ;;  %v2662_v48 = vmov 0  ;;  %v2664_v51 = vmov 0  ;;  %v2666_v53 = vmov 0 }
   0x2   :  { %1407 = vmatprep.subr.bf16.mxu0 %v1460_v0  ;;  %1439 = vmatprep.subr.bf16.mxu1 %v1460_v0  ;;  %v1468_v4 = vld [vmem:[%s2603_s0] sm:$0xff]   ;;  %v1463_v6 = vld [vmem:[%s2602_s1 + $0x18] sm:$0xff]   ;;  %v387_v8 = vld [vmem:[%s2604_s2 + $0x10] sm:$0xff]  ;;  %v1663_v31 = vshrl.u32 %v313_v30, 7  ;;  %v1665_v32 = vand.u32 127, %v313_v30  ;;  %v2668_v54 = vmov 0 }
   0x3   :  { %1408 = vmatpush3.bf16.xpose.msra.mxu0 %v1460_v0  ;;  %1447 = vmatpush3.bf16.xpose.msra.mxu1 %v1460_v0  ;;  %v1469_v5 = vld [vmem:[%s2603_s0 + $0x20] sm:$0xff]   ;;  %v386_v9 = vld [vmem:[%s2604_s2 + $0x8] sm:$0xff]  ;;  %v388_v10 = vld [vmem:[%s2604_s2 + $0x18] sm:$0xff]  ;;  %v2670_v57 = vmov 0  ;;  %v2672_v61 = vmov 0  ;;  %v2674_v63 = vmov 0 }
   0x4   :  { %1409 = vmatprep.subr.bf16.mxu0 %v1461_v2  ;;  %1440 = vmatprep.subr.bf16.mxu1 %v1461_v2  ;;  %v385_v7 = vld [vmem:[%s2604_s2] sm:$0xff]  ;;  %v390_v12 = vld [vmem:[%s2604_s2 + $0x28] sm:$0xff]  ;;  %v391_v14 = vld [vmem:[%s2604_s2 + $0x30] sm:$0xff]  ;;  %v315_v33 = vadd.s32 8, %v1663_v31  ;;  %v316_v34 = vadd.s32 16, %v1663_v31  ;;  %vm2625_vm0 = vcmp.lt.s32.totalorder %v1665_v32, 16  ;;  %vm353_vm1 = vcmp.ne.s32.totalorder %v1663_v31, %v1665_v32 }
   0x5   :  { %1423 = vmatprep.mubr.bf16.mxu0 %v1468_v4  ;;  %1431 = vmatprep.mubr.bf16.mxu1 %v1469_v5  ;;  %v389_v11 = vld [vmem:[%s2604_s2 + $0x20] sm:$0xff]  ;;  %v392_v15 = vld [vmem:[%s2604_s2 + $0x38] sm:$0xff]  ;;  %v394_v17 = vld [vmem:[%s2604_s2 + $0x48] sm:$0xff]  ;;  %v317_v35 = vadd.s32 24, %v1663_v31  ;;  %v318_v36 = vadd.s32 32, %v1663_v31  ;;  %v319_v43 = vadd.s32 40, %v1663_v31 }
   0x6   :  { %403 = vperm.xlu0 %1458, %v385_v7   ;;  %409 = vperm.xlu1 %1459, %v387_v8   ;;  %v1464_v13 = vld [vmem:[%s2602_s1 + $0x20] sm:$0xff]   ;;  %v1465_v18 = vld [vmem:[%s2602_s1 + $0x28] sm:$0xff]   ;;  %v395_v19 = vld [vmem:[%s2604_s2 + $0x50] sm:$0xff]  ;;  %vm354_vm2 = vcmp.ne.s32.totalorder %v315_v33, %v1665_v32  ;;  %vm355_vm3 = vcmp.ne.s32.totalorder %v316_v34, %v1665_v32  ;;  %v320_v45 = vadd.s32 48, %v1663_v31  ;;  %v321_v52 = vadd.s32 56, %v1663_v31 }
   0x7   :  { %v393_v16 = vld [vmem:[%s2604_s2 + $0x40] sm:$0xff]  ;;  %v396_v20 = vld [vmem:[%s2604_s2 + $0x58] sm:$0xff]  ;;  %v1466_v22 = vld [vmem:[%s2602_s1 + $0x30] sm:$0xff]   ;;  %vm356_vm6 = vcmp.ne.s32.totalorder %v317_v35, %v1665_v32  ;;  %vm357_vm9 = vcmp.ne.s32.totalorder %v318_v36, %v1665_v32  ;;  %v322_v55 = vadd.s32 64, %v1663_v31  ;;  %v323_v0 = vadd.s32 72, %v1663_v31 }
   0x8   :  { %v397_v21 = vld [vmem:[%s2604_s2 + $0x60] sm:$0xff]  ;;  %v1467_v23 = vld [vmem:[%s2602_s1 + $0x38] sm:$0xff]   ;;  %v1470_v24 = vld [vmem:[%s2603_s0 + $0x8] sm:$0xff]   ;;  %v2676_v1 = vmov 0  ;;  %v2681_v7 = vmov 0 }
   0x9   :  { %v1471_v25 = vld [vmem:[%s2603_s0 + $0x28] sm:$0xff]   ;;  %v1472_v26 = vld [vmem:[%s2603_s0 + $0x10] sm:$0xff]   ;;  %v1474_v28 = vld [vmem:[%s2603_s0 + $0x18] sm:$0xff]  }
   0xa   :  { %406 = vperm.xlu0 %1458, %v386_v9   ;;  %412 = vperm.xlu1 %1459, %v388_v10   ;;  %v1473_v27 = vld [vmem:[%s2603_s0 + $0x30] sm:$0xff]   ;;  %v1475_v29 = vld [vmem:[%s2603_s0 + $0x38] sm:$0xff]   ;;  %v1678_v37 = vld [vmem:[%s2605_s3] ss:$0 sm:$0xff]  ;;  %v2683_v9 = vmov 0 }
   0xb   :  { %1410 = vmatpush3.bf16.xpose.msra.mxu0 %v1461_v2  ;;  %1448 = vmatpush3.bf16.xpose.msra.mxu1 %v1461_v2  ;;  %vm1683_vm4 = vmand %vm2625_vm0, %vm353_vm1  ;;  %v324_v2 = vadd.s32 80, %v1663_v31 }
   0xc   :  { %1411 = vmatprep.subr.bf16.mxu0 %v1462_v3  ;;  %1441 = vmatprep.subr.bf16.mxu1 %v1462_v3  ;;  %vm1689_vm5 = vmand %vm2625_vm0, %vm354_vm2  ;;  %vm358_vm2 = vcmp.ne.s32.totalorder %v319_v43, %v1665_v32  ;;  %v329_v43 = vadd.s32 120, %v1663_v31 }
   0xd   :  { %v2657_v41 = vsel %vm1689_vm5, 4294967295, %v2656_v41  ;;  %vm1697_vm8 = vmand %vm2625_vm0, %vm355_vm3 }
   0xe   :  { %415 = vperm.xlu0 %1458, %v389_v11   ;;  %418 = vperm.xlu1 %1459, %v390_v12   ;;  %vm1716_vm12 = vmand %vm2625_vm0, %vm356_vm6  ;;  %vm359_vm6 = vcmp.ne.s32.totalorder %v320_v45, %v1665_v32  ;;  %v2687_v11 = vmov 0 }
   0xf   :  { %v2663_v48 = vsel %vm1716_vm12, 4294967295, %v2662_v48  ;;  %vm1722_vm13 = vmand %vm2625_vm0, %vm357_vm9 }
  0x10   :  { %v2665_v51 = vsel %vm1722_vm13, 4294967295, %v2664_v51  ;;  %vm1758_vm9 = vmand %vm2625_vm0, %vm358_vm2 }
  0x11   :  { %v2673_v61 = vsel %vm1758_vm9, 4294967295, %v2672_v61 }
  0x12   :  { %421 = vperm.xlu0 %1458, %v391_v14   ;;  %424 = vperm.xlu1 %1459, %v392_v15   ;;  %v2689_v15 = vmov 0 }
  0x13   :  { %1412 = vmatpush3.bf16.xpose.msra.mxu0 %v1462_v3  ;;  %1449 = vmatpush3.bf16.xpose.msra.mxu1 %v1462_v3  ;;  %v2678_v3 = vmov 0 }
  0x14   :  { %1413 = vmatprep.subr.bf16.mxu0 %v1463_v6  ;;  %1442 = vmatprep.subr.bf16.mxu1 %v1463_v6 }
  0x16   :  { %427 = vperm.xlu0 %1458, %v393_v16   ;;  %430 = vperm.xlu1 %1459, %v394_v17  }
  0x1a   :  { %433 = vperm.xlu0 %1458, %v395_v19   ;;  %436 = vperm.xlu1 %1459, %v396_v20   ;;  %v2695_v19 = vmov 0 }
  0x1b   :  { %1414 = vmatpush3.bf16.xpose.msra.mxu0 %v1463_v6  ;;  %1450 = vmatpush3.bf16.xpose.msra.mxu1 %v1463_v6 }
  0x1c   :  { %1415 = vmatprep.subr.bf16.mxu0 %v1464_v13  ;;  %1443 = vmatprep.subr.bf16.mxu1 %v1464_v13 }
  0x1e   :  { %439 = vperm.xlu0 %1458, %v397_v21  }
  0x23   :  { %1416 = vmatpush3.bf16.xpose.msra.mxu0 %v1464_v13  ;;  %1451 = vmatpush3.bf16.xpose.msra.mxu1 %v1464_v13 }
  0x24   :  { %1417 = vmatprep.subr.bf16.mxu0 %v1465_v18  ;;  %1444 = vmatprep.subr.bf16.mxu1 %v1465_v18 }
  0x2b   :  { %1418 = vmatpush3.bf16.xpose.msra.mxu0 %v1465_v18  ;;  %1452 = vmatpush3.bf16.xpose.msra.mxu1 %v1465_v18 }
  0x2c   :  { %1419 = vmatprep.subr.bf16.mxu0 %v1466_v22  ;;  %1445 = vmatprep.subr.bf16.mxu1 %v1466_v22 }
  0x33   :  { %1420 = vmatpush3.bf16.xpose.msra.mxu0 %v1466_v22  ;;  %1453 = vmatpush3.bf16.xpose.msra.mxu1 %v1466_v22 }
  0x34   :  { %1421 = vmatprep.subr.bf16.mxu0 %v1467_v23  ;;  %1446 = vmatprep.subr.bf16.mxu1 %v1467_v23 }
  0x3b   :  { %1422 = vmatpush3.bf16.xpose.msra.mxu0 %v1467_v23  ;;  %1454 = vmatpush3.bf16.xpose.msra.mxu1 %v1467_v23  ;;  %v2697_v23 = vmov 0 }
  0x42   :  { %1424 = vmatmul.mubr.bf16.vlgmr.msra.gmra.mrb[0].mxu0 %v1470_v24  ;;  %1432 = vmatmul.mubr.bf16.vlgmr.msra.gmra.mrb[0].mxu1 %v1471_v25  ;;  %v1550_v25 = vmov -1e+30  }
  0x43   :  { %1427 = vmatprep.mubr.bf16.mxu0 %v1472_v26  ;;  %1435 = vmatprep.mubr.bf16.mxu1 %v1473_v27 }
  0x4a   :  { %1428 = vmatmul.mubr.bf16.gmra.mrb[4].mxu0 %v1474_v28  ;;  %1436 = vmatmul.mubr.bf16.gmra.mrb[4].mxu1 %v1475_v29 }
  0x85   :  { %v404_v39 = vpop.permute.xlu0 %403  ;;  %v410_v40 = vpop.permute.xlu1 %409 }
  0x86   :  { %vm454_vm7 = vcmp.eq.s32.totalorder %v404_v39, %v1678_v37  ;;  %vm456_vm10 = vcmp.eq.s32.totalorder %v410_v40, %v1678_v37 }
  0x87   :  { %vm1706_vm11 = vmand %vm454_vm7, %vm1683_vm4 }
  0x88   :  { %v1375_v47 = vsel %vm1706_vm11, 1.0, %v2628_v46  ;;  %vm1731_vm1 = vmand %vm456_vm10, %vm1697_vm8  ;;  %vm361_vm10 = vcmp.ne.s32.totalorder %v322_v55, %v1665_v32  ;;  %v325_v55 = vadd.s32 88, %v1663_v31 }
  0x89   :  { %919 = vadd.xlane.f32.xlu0 %v1375_v47  ;;  %v407_v49 = vpop.permute.xlu0 %406  ;;  %v413_v50 = vpop.permute.xlu1 %412  ;;  %v2667_v53 = vsel %vm1731_vm1, 4294967295, %v2666_v53  ;;  %v1377_v62 = vsel %vm1731_vm1, 1.0, %v2628_v46  ;;  %v326_v47 = vadd.s32 96, %v1663_v31 }
  0x8a   :  { %vm455_vm14 = vcmp.eq.s32.totalorder %v407_v49, %v1678_v37  ;;  %vm457_vm15 = vcmp.eq.s32.totalorder %v413_v50, %v1678_v37 }
  0x8b   :  { %vm1738_vm3 = vmand %vm455_vm14, %vm1689_vm5 }
  0x8c   :  { %v2669_v54 = vsel %vm1738_vm3, 4294967295, %v2668_v54  ;;  %v1376_v56 = vsel %vm1738_vm3, 1.0, %v2628_v46  ;;  %vm1749_vm7 = vmand %vm457_vm15, %vm1716_vm12  ;;  %vm363_vm3 = vcmp.ne.s32.totalorder %v324_v2, %v1665_v32 }
  0x8d   :  { %v2671_v57 = vsel %vm1749_vm7, 4294967295, %v2670_v57  ;;  %921 = vadd.xlane.f32.xlu0 %v1376_v56  ;;  %v416_v58 = vpop.permute.xlu0 %415  ;;  %v419_v59 = vpop.permute.xlu1 %418  ;;  %v1378_v60 = vsel %vm1749_vm7, 1.0, %v2628_v46  ;;  %vm1770_vm7 = vmand %vm2625_vm0, %vm359_vm6  ;;  %vm2680_vm6 = vcmp.ne.s32.totalorder %v321_v52, %v1665_v32 }
  0x8e   :  { %vm458_vm14 = vcmp.eq.s32.totalorder %v416_v58, %v1678_v37  ;;  %vm459_vm15 = vcmp.eq.s32.totalorder %v419_v59, %v1678_v37  ;;  %925 = vadd.xlane.f32.xlu1 %v1378_v60  ;;  %v2675_v63 = vsel %vm1770_vm7, 4294967295, %v2674_v63 }
  0x8f   :  { %vm1777_vm2 = vmand %vm458_vm14, %vm1722_vm13 }
  0x90   :  { %v2677_v1 = vsel %vm1777_vm2, 4294967295, %v2676_v1  ;;  %vm1785_vm1 = vmand %vm459_vm15, %vm1758_vm9  ;;  %v1379_v8 = vsel %vm1777_vm2, 1.0, %v2628_v46 }
  0x91   :  { %v2679_v3 = vsel %vm1785_vm1, 4294967295, %v2678_v3  ;;  %923 = vadd.xlane.f32.xlu0 %v1377_v62  ;;  %v422_v4 = vpop.permute.xlu0 %421  ;;  %v425_v5 = vpop.permute.xlu1 %424  ;;  %v1380_v6 = vsel %vm1785_vm1, 1.0, %v2628_v46  ;;  %vm1796_vm14 = vmand %vm2625_vm0, %vm2680_vm6  ;;  %vm362_vm6 = vcmp.ne.s32.totalorder %v323_v0, %v1665_v32 }
  0x92   :  { %v2682_v7 = vsel %vm1796_vm14, 4294967295, %v2681_v7  ;;  %vm460_vm15 = vcmp.eq.s32.totalorder %v422_v4, %v1678_v37  ;;  %vm461_vm9 = vcmp.eq.s32.totalorder %v425_v5, %v1678_v37  ;;  %929 = vadd.xlane.f32.xlu1 %v1380_v6  ;;  %vm1807_vm1 = vmand %vm2625_vm0, %vm361_vm10 }
  0x93   :  { %v2684_v9 = vsel %vm1807_vm1, 4294967295, %v2683_v9  ;;  %vm1814_vm13 = vmand %vm460_vm15, %vm1770_vm7 }
  0x94   :  { %vm1821_vm2 = vmand %vm461_vm9, %vm1796_vm14  ;;  %v1381_v16 = vsel %vm1814_vm13, 1.0, %v2628_v46 }
  0x95   :  { %v2688_v11 = vsel %vm1821_vm2, 4294967295, %v2687_v11  ;;  %927 = vadd.xlane.f32.xlu0 %v1379_v8  ;;  %v428_v12 = vpop.permute.xlu0 %427  ;;  %v431_v13 = vpop.permute.xlu1 %430  ;;  %v1382_v14 = vsel %vm1821_vm2, 1.0, %v2628_v46  ;;  %vm1830_vm10 = vmand %vm2625_vm0, %vm362_vm6 }
  0x96   :  { %v2690_v15 = vsel %vm1830_vm10, 4294967295, %v2689_v15  ;;  %vm462_vm15 = vcmp.eq.s32.totalorder %v428_v12, %v1678_v37  ;;  %vm463_vm9 = vcmp.eq.s32.totalorder %v431_v13, %v1678_v37  ;;  %933 = vadd.xlane.f32.xlu1 %v1382_v14  ;;  %vm1841_vm7 = vmand %vm2625_vm0, %vm363_vm3  ;;  %v2701_v14 = vmov 0 }
  0x97   :  { %vm1847_vm6 = vmand %vm462_vm15, %vm1807_vm1 }
  0x98   :  { %vm1853_vm2 = vmand %vm463_vm9, %vm1830_vm10  ;;  %v1383_v22 = vsel %vm1847_vm6, 1.0, %v2628_v46  ;;  %vm2619_vm9 = vcmask 7168  }
  0x99   :  { %v2696_v19 = vsel %vm1853_vm2, 4294967295, %v2695_v19  ;;  %931 = vadd.xlane.f32.xlu0 %v1381_v16  ;;  %v434_v20 = vpop.permute.xlu0 %433  ;;  %v1384_v21 = vsel %vm1853_vm2, 1.0, %v2628_v46  ;;  %55 = vst.msk [vmem:[#allocation4] sm:$0xff] %vm2619_vm9, %v2628_v46  ;;  %39 = vst.msk [vmem:[#allocation3] sm:$0xff] %vm2619_vm9, %v2628_v46  ;;  %vm364_vm2 = vcmp.ne.s32.totalorder %v325_v55, %v1665_v32  ;;  %v2047_v8 = vpop.permute.xlu1 %436 }
  0x9a   :  { %vm464_vm3 = vcmp.eq.s32.totalorder %v434_v20, %v1678_v37  ;;  %937 = vadd.xlane.f32.xlu1 %v1384_v21  ;;  %40 = vst.msk [vmem:[#allocation3 + $0x8] sm:$0xff] %vm2619_vm9, %v2628_v46  ;;  %41 = vst.msk [vmem:[#allocation3 + $0x10] sm:$0xff] %vm2619_vm9, %v2628_v46 }
  0x9b   :  { %vm1866_vm15 = vmand %vm464_vm3, %vm1841_vm7  ;;  %42 = vst.msk [vmem:[#allocation3 + $0x18] sm:$0xff] %vm2619_vm9, %v2628_v46  ;;  %vm368_vm3 = vcmp.ne.s32.totalorder %v329_v43, %v1665_v32 }
  0x9c   :  { %v2698_v23 = vsel %vm1866_vm15, 4294967295, %v2697_v23  ;;  %v1385_v24 = vsel %vm1866_vm15, 1.0, %v2628_v46  ;;  %43 = vst.msk [vmem:[#allocation3 + $0x20] sm:$0xff] %vm2619_vm9, %v2628_v46  ;;  %44 = vst.msk [vmem:[#allocation3 + $0x28] sm:$0xff] %vm2619_vm9, %v2628_v46 }
  0x9d   :  { %935 = vadd.xlane.f32.xlu0 %v1383_v22  ;;  %45 = vst.msk [vmem:[#allocation3 + $0x30] sm:$0xff] %vm2619_vm9, %v2628_v46  ;;  %46 = vst.msk [vmem:[#allocation3 + $0x38] sm:$0xff] %vm2619_vm9, %v2628_v46  ;;  %v440_v49 = vpop.permute.xlu0 %439 }
  0x9e   :  { %47 = vst.msk [vmem:[#allocation3 + $0x40] sm:$0xff] %vm2619_vm9, %v2628_v46  ;;  %48 = vst.msk [vmem:[#allocation3 + $0x48] sm:$0xff] %vm2619_vm9, %v2628_v46 }
  0x9f   :  { %49 = vst.msk [vmem:[#allocation3 + $0x50] sm:$0xff] %vm2619_vm9, %v2628_v46  ;;  %50 = vst.msk [vmem:[#allocation3 + $0x58] sm:$0xff] %vm2619_vm9, %v2628_v46 }
  0xa0   :  { %51 = vst.msk [vmem:[#allocation3 + $0x60] sm:$0xff] %vm2619_vm9, %v2628_v46  ;;  %52 = vst.msk [vmem:[#allocation3 + $0x68] sm:$0xff] %vm2619_vm9, %v2628_v46  ;;  %v903_v0 = vld [vmem:[#allocation4] sm:$0xff] }
  0xa1   :  { %939 = vadd.xlane.f32.xlu0 %v1385_v24  ;;  %53 = vst.msk [vmem:[#allocation3 + $0x70] sm:$0xff] %vm2619_vm9, %v2628_v46  ;;  %54 = vst.msk [vmem:[#allocation3 + $0x78] sm:$0xff] %vm2619_vm9, %v2628_v46 }
  0xa2   :  { %56 = vst.msk [vmem:[#allocation4 + $0x8] sm:$0xff] %vm2619_vm9, %v2628_v46  ;;  %57 = vst.msk [vmem:[#allocation4 + $0x10] sm:$0xff] %vm2619_vm9, %v2628_v46 }
  0xa3   :  { %58 = vst.msk [vmem:[#allocation4 + $0x18] sm:$0xff] %vm2619_vm9, %v2628_v46  ;;  %59 = vst.msk [vmem:[#allocation4 + $0x20] sm:$0xff] %vm2619_vm9, %v2628_v46 }
  0xa4   :  { %60 = vst.msk [vmem:[#allocation4 + $0x28] sm:$0xff] %vm2619_vm9, %v2628_v46  ;;  %61 = vst.msk [vmem:[#allocation4 + $0x30] sm:$0xff] %vm2619_vm9, %v2628_v46 }
  0xa5   :  { %62 = vst.msk [vmem:[#allocation4 + $0x38] sm:$0xff] %vm2619_vm9, %v2628_v46  ;;  %63 = vst.msk [vmem:[#allocation4 + $0x40] sm:$0xff] %vm2619_vm9, %v2628_v46 }
  0xa6   :  { %64 = vst.msk [vmem:[#allocation4 + $0x48] sm:$0xff] %vm2619_vm9, %v2628_v46  ;;  %65 = vst.msk [vmem:[#allocation4 + $0x50] sm:$0xff] %vm2619_vm9, %v2628_v46 }
  0xa7   :  { %66 = vst.msk [vmem:[#allocation4 + $0x58] sm:$0xff] %vm2619_vm9, %v2628_v46  ;;  %67 = vst.msk [vmem:[#allocation4 + $0x60] sm:$0xff] %vm2619_vm9, %v2628_v46 }
  0xa8   :  { %68 = vst.msk [vmem:[#allocation4 + $0x68] sm:$0xff] %vm2619_vm9, %v2628_v46  ;;  %69 = vst.msk [vmem:[#allocation4 + $0x70] sm:$0xff] %vm2619_vm9, %v2628_v46 }
  0xa9   :  { %70 = vst.msk [vmem:[#allocation4 + $0x78] sm:$0xff] %vm2619_vm9, %v2628_v46  ;;  %71 = vst.msk [vmem:[#allocation5] sm:$0xff] %vm2619_vm9, %v2628_v46  ;;  %v904_v20 = vld [vmem:[#allocation4 + $0x8] sm:$0xff]  ;;  %v905_v43 = vld [vmem:[#allocation4 + $0x10] sm:$0xff] }
  0xaa   :  { %72 = vst.msk [vmem:[#allocation5 + $0x8] sm:$0xff] %vm2619_vm9, %v2628_v46  ;;  %73 = vst.msk [vmem:[#allocation5 + $0x10] sm:$0xff] %vm2619_vm9, %v2628_v46  ;;  %v906_v22 = vld [vmem:[#allocation4 + $0x18] sm:$0xff] }
  0xab   :  { %74 = vst.msk [vmem:[#allocation5 + $0x18] sm:$0xff] %vm2619_vm9, %v2628_v46  ;;  %75 = vst.msk [vmem:[#allocation5 + $0x20] sm:$0xff] %vm2619_vm9, %v2628_v46 }
  0xac   :  { %76 = vst.msk [vmem:[#allocation5 + $0x28] sm:$0xff] %vm2619_vm9, %v2628_v46  ;;  %77 = vst.msk [vmem:[#allocation5 + $0x30] sm:$0xff] %vm2619_vm9, %v2628_v46 }
  0xad   :  { %78 = vst.msk [vmem:[#allocation5 + $0x38] sm:$0xff] %vm2619_vm9, %v2628_v46  ;;  %79 = vst.msk [vmem:[#allocation5 + $0x40] sm:$0xff] %vm2619_vm9, %v2628_v46 }
  0xae   :  { %80 = vst.msk [vmem:[#allocation5 + $0x48] sm:$0xff] %vm2619_vm9, %v2628_v46  ;;  %81 = vst.msk [vmem:[#allocation5 + $0x50] sm:$0xff] %vm2619_vm9, %v2628_v46  ;;  %v914_v42 = vld [vmem:[#allocation4 + $0x58] sm:$0xff] }
  0xaf   :  { %82 = vst.msk [vmem:[#allocation5 + $0x58] sm:$0xff] %vm2619_vm9, %v2628_v46  ;;  %83 = vst.msk [vmem:[#allocation5 + $0x60] sm:$0xff] %vm2619_vm9, %v2628_v46 }
  0xb0   :  { %84 = vst.msk [vmem:[#allocation5 + $0x68] sm:$0xff] %vm2619_vm9, %v2628_v46  ;;  %85 = vst.msk [vmem:[#allocation5 + $0x70] sm:$0xff] %vm2619_vm9, %v2628_v46 }
  0xb1   :  { %86 = vst.msk [vmem:[#allocation5 + $0x78] sm:$0xff] %vm2619_vm9, %v2628_v46  ;;  %25 = vst.msk [vmem:[#allocation2 + $0x10] sm:$0xff] %vm2619_vm9, %v1550_v25 }
  0xb2   :  { %23 = vst.msk [vmem:[#allocation2] sm:$0xff] %vm2619_vm9, %v1550_v25  ;;  %24 = vst.msk [vmem:[#allocation2 + $0x8] sm:$0xff] %vm2619_vm9, %v1550_v25 }
  0xb3   :  { %26 = vst.msk [vmem:[#allocation2 + $0x18] sm:$0xff] %vm2619_vm9, %v1550_v25  ;;  %27 = vst.msk [vmem:[#allocation2 + $0x20] sm:$0xff] %vm2619_vm9, %v1550_v25 }
  0xb4   :  { %28 = vst.msk [vmem:[#allocation2 + $0x28] sm:$0xff] %vm2619_vm9, %v1550_v25  ;;  %29 = vst.msk [vmem:[#allocation2 + $0x30] sm:$0xff] %vm2619_vm9, %v1550_v25 }
  0xb5   :  { %30 = vst.msk [vmem:[#allocation2 + $0x38] sm:$0xff] %vm2619_vm9, %v1550_v25  ;;  %31 = vst.msk [vmem:[#allocation2 + $0x40] sm:$0xff] %vm2619_vm9, %v1550_v25 }
  0xb6   :  { %32 = vst.msk [vmem:[#allocation2 + $0x48] sm:$0xff] %vm2619_vm9, %v1550_v25  ;;  %33 = vst.msk [vmem:[#allocation2 + $0x50] sm:$0xff] %vm2619_vm9, %v1550_v25 }
  0xb7   :  { %34 = vst.msk [vmem:[#allocation2 + $0x58] sm:$0xff] %vm2619_vm9, %v1550_v25  ;;  %35 = vst.msk [vmem:[#allocation2 + $0x60] sm:$0xff] %vm2619_vm9, %v1550_v25 }
  0xb8   :  { %36 = vst.msk [vmem:[#allocation2 + $0x68] sm:$0xff] %vm2619_vm9, %v1550_v25  ;;  %37 = vst.msk [vmem:[#allocation2 + $0x70] sm:$0xff] %vm2619_vm9, %v1550_v25 }
  0xb9   :  { %38 = vst.msk [vmem:[#allocation2 + $0x78] sm:$0xff] %vm2619_vm9, %v1550_v25  ;;  %vm365_vm9 = vcmp.ne.s32.totalorder %v326_v47, %v1665_v32  ;;  %vm2064_vm15 = vmand %vm2625_vm0, %vm364_vm2 }
 0x115   :  { %v1985_v26 = vpop.f32.mrb[0].mxu0  ;;  %v1987_v27 = vpop.f32.mrb[0].mxu1 }
 0x116   :  { %v1989_v28 = vpop.f32.mrb[1].mxu0  ;;  %v1991_v29 = vpop.f32.mrb[1].mxu1  ;;  %v504_v30 = vsel %vm1697_vm8, %v1985_v26, -1e+30  ;;  %v512_v40 = vsel %vm1841_vm7, %v1987_v27, -1e+30 }
 0x117   :  { %v1996_v33 = vpop.f32.mrb[2].mxu1  ;;  %522 = vmax.xlane.f32.xlu1 %v504_v30  ;;  %v1998_v34 = vpop.f32.mrb[2].mxu0  ;;  %v502_v35 = vsel %vm1683_vm4, %v1989_v28, -1e+30  ;;  %v999_v45 = vsel %vm1706_vm11, %v1989_v28, 0.0  ;;  %vm2034_vm11 = vmand %vm2625_vm0, %vm368_vm3  ;;  %vm466_vm3 = vcmp.eq.s32.totalorder %v440_v49, %v1678_v37  ;;  %v908_v49 = vld [vmem:[#allocation4 + $0x28] sm:$0xff] }
 0x118   :  { %v2003_v36 = vpop.f32.mrb[3].mxu1  ;;  %518 = vmax.xlane.f32.xlu0 %v502_v35  ;;  %v2005_v39 = vpop.f32.mrb[3].mxu0  ;;  %v510_v44 = vsel %vm1807_vm1, %v1991_v29, -1e+30  ;;  %v505_v12 = vsel %vm1716_vm12, %v1998_v34, -1e+30 }
 0x119   :  { %v920_v6 = vpop.xlane.xlu0 %919  ;;  %vm2705_vm12 = vcmask 7168   ;;  %v513_v30 = vsel %vm2064_vm15, %v1996_v33, -1e+30 }
 0x11a   :  { %v951_v16 = vadd.f32 %v920_v6, %v903_v0  ;;  %vm2708_vm2 = vmmov %vm2705_vm12  ;;  %v907_v6 = vld [vmem:[#allocation4 + $0x20] sm:$0xff] }
 0x11b   :  { %538 = vmax.xlane.f32.xlu1 %v512_v40  ;;  %v926_v40 = vpop.xlane.xlu1 %925 }
 0x11c   :  { %1015 = vadd.xlane.f32.xlu0 %v999_v45  ;;  %967 = vst.msk [vmem:[#allocation4] sm:$0xff] %vm2705_vm12, %v951_v16  ;;  %v954_v45 = vadd.f32 %v926_v40, %v906_v22  ;;  %v328_v22 = vadd.s32 112, %v1663_v31 }
 0x11d   :  { %v2016_v50 = vpop.f32.mrb[4].mxu0  ;;  %v2018_v52 = vpop.f32.mrb[4].mxu1 }
 0x11e   :  { %v2021_v56 = vpop.f32.mrb[5].mxu0  ;;  %v2023_v58 = vpop.f32.mrb[5].mxu1  ;;  %970 = vst.msk [vmem:[#allocation4 + $0x18] sm:$0xff] %vm2708_vm2, %v954_v45 }
 0x11f   :  { %534 = vmax.xlane.f32.xlu1 %v510_v44  ;;  %v2028_v59 = vpop.f32.mrb[6].mxu0  ;;  %v2030_v60 = vpop.f32.mrb[6].mxu1  ;;  %v503_v44 = vsel %vm1689_vm5, %v2005_v39, -1e+30 }
 0x120   :  { %v2039_v2 = vpop.f32.mrb[7].mxu0  ;;  %v509_v4 = vsel %vm1796_vm14, %v2028_v59, -1e+30  ;;  %v2044_v5 = vpop.f32.mrb[7].mxu1  ;;  %v517_v13 = vsel %vm2034_vm11, %v2030_v60, -1e+30  ;;  %vm2058_vm14 = vmand %vm2625_vm0, %vm365_vm9  ;;  %vm2713_vm0 = vnez %v2675_v63 }
 0x121   :  { %532 = vmax.xlane.f32.xlu0 %v509_v4  ;;  %v2702_v14 = vsel %vm2058_vm14, 4294967295, %v2701_v14  ;;  %vm2071_vm1 = vmand %vm466_vm3, %vm2058_vm14  ;;  %v922_v25 = vpop.xlane.xlu0 %921  ;;  %v930_v4 = vpop.xlane.xlu1 %929 }
 0x122   :  { %v952_v35 = vadd.f32 %v922_v25, %v904_v20  ;;  %v1387_v47 = vsel %vm2071_vm1, 1.0, %v2628_v46  ;;  %vm2709_vm9 = vmmov %vm2708_vm2  ;;  %v511_v20 = vsel %vm1830_vm10, %v2003_v36, -1e+30  ;;  %vm2715_vm10 = vcmp.lt.s32.totalorder %v1665_v32, 16  ;;  %v915_v46 = vld [vmem:[#allocation4 + $0x60] sm:$0xff] }
 0x123   :  { %524 = vmax.xlane.f32.xlu1 %v505_v12  ;;  %v956_v12 = vadd.f32 %v930_v4, %v908_v49  ;;  %vm2710_vm3 = vmmov %vm2708_vm2  ;;  %v508_v4 = vsel %vm2713_vm0, %v2016_v50, -1e+30 }
 0x124   :  { %968 = vst.msk [vmem:[#allocation4 + $0x8] sm:$0xff] %vm2705_vm12, %v952_v35  ;;  %v909_v35 = vld [vmem:[#allocation4 + $0x30] sm:$0xff]  ;;  %vm2711_vm12 = vmmov %vm2708_vm2 }
 0x125   :  { %548 = vmax.xlane.f32.xlu0 %v517_v13  ;;  %v924_v55 = vpop.xlane.xlu0 %923  ;;  %v910_v13 = vld [vmem:[#allocation4 + $0x38] sm:$0xff]  ;;  %972 = vst.msk [vmem:[#allocation4 + $0x28] sm:$0xff] %vm2710_vm3, %v956_v12  ;;  %vm367_vm3 = vcmp.ne.s32.totalorder %v328_v22, %v1665_v32 }
 0x126   :  { %v953_v0 = vadd.f32 %v924_v55, %v905_v43  ;;  %v912_v43 = vld [vmem:[#allocation4 + $0x48] sm:$0xff] }
 0x127   :  { %540 = vmax.xlane.f32.xlu1 %v513_v30  ;;  %v934_v30 = vpop.xlane.xlu1 %933 }
 0x128   :  { %969 = vst.msk [vmem:[#allocation4 + $0x10] sm:$0xff] %vm2709_vm9, %v953_v0  ;;  %v958_v40 = vadd.f32 %v934_v30, %v910_v13  ;;  %vm2712_vm9 = vnez %v2669_v54  ;;  %v913_v13 = vld [vmem:[#allocation4 + $0x50] sm:$0xff] }
 0x129   :  { %943 = vadd.xlane.f32.xlu0 %v1387_v47  ;;  %v928_v16 = vpop.xlane.xlu0 %927  ;;  %v1000_v47 = vsel %vm2712_vm9, %v2005_v39, 0.0 }
 0x12a   :  { %v955_v25 = vadd.f32 %v928_v16, %v907_v6  ;;  %974 = vst.msk [vmem:[#allocation4 + $0x38] sm:$0xff] %vm2708_vm2, %v958_v40  ;;  %v514_v40 = vsel %vm2058_vm14, %v2023_v58, -1e+30 }
 0x12b   :  { %520 = vmax.xlane.f32.xlu1 %v503_v44  ;;  %v938_v55 = vpop.xlane.xlu1 %937  ;;  %v911_v44 = vld [vmem:[#allocation4 + $0x40] sm:$0xff] }
 0x12c   :  { %971 = vst.msk [vmem:[#allocation4 + $0x20] sm:$0xff] %vm2711_vm12, %v955_v25  ;;  %v960_v0 = vadd.f32 %v938_v55, %v912_v43  ;;  %vm2714_vm12 = vmmov %vm2708_vm2  ;;  %v399_v25 = vld [vmem:[%s2604_s2 + $0x70] sm:$0xff] }
 0x12d   :  { %v932_v45 = vpop.xlane.xlu0 %931  ;;  %vm2104_vm2 = vmand %vm2715_vm10, %vm367_vm3  ;;  %vm2720_vm10 = vnez %v2665_v51 }
 0x12e   :  { %v957_v49 = vadd.f32 %v932_v45, %v909_v35  ;;  %vm2718_vm9 = vmmov %vm2714_vm12  ;;  %v516_v16 = vsel %vm2104_vm2, %v2018_v52, -1e+30  ;;  %v506_v30 = vsel %vm2720_vm10, %v2021_v56, -1e+30  ;;  %v327_v35 = vadd.s32 104, %v1663_v31 }
 0x12f   :  { %536 = vmax.xlane.f32.xlu1 %v511_v20  ;;  %976 = vst.msk [vmem:[#allocation4 + $0x48] sm:$0xff] %vm2718_vm9, %v960_v0  ;;  %vm2719_vm5 = vmmov %vm2718_vm9  ;;  %vm2723_vm9 = vcmp.lt.s32.totalorder %v1665_v32, 16 }
 0x130   :  { %973 = vst.msk [vmem:[#allocation4 + $0x30] sm:$0xff] %vm2714_vm12, %v957_v49  ;;  %vm2721_vm3 = vmmov %vm2719_vm5  ;;  %vm2722_vm12 = vnez %v2673_v61  ;;  %v2139_v49 = vld [vmem:[#allocation2] sm:$0xff] }
 0x131   :  { %v936_v54 = vpop.xlane.xlu0 %935  ;;  %v507_v43 = vsel %vm2722_vm12, %v2039_v2, -1e+30  ;;  %2727 = vst [vmem:[#allocation7_spill] sm:$0xff] %v2139_v49 }
 0x132   :  { %v959_v12 = vadd.f32 %v936_v54, %v911_v44 }
 0x133   :  { %1017 = vadd.xlane.f32.xlu1 %v1000_v47  ;;  %v2137_v47 = vld [vmem:[#allocation2 + $0x10] sm:$0xff] }
 0x134   :  { %975 = vst.msk [vmem:[#allocation4 + $0x40] sm:$0xff] %vm2719_vm5, %v959_v12  ;;  %vm366_vm5 = vcmp.ne.s32.totalorder %v327_v35, %v1665_v32  ;;  %2726 = vst [vmem:[#allocation6_spill] sm:$0xff] %v2137_v47  ;;  %v983_v12 = vld [vmem:[#allocation5] sm:$0xff]  ;;  %v2191_v35 = vld [vmem:[#allocation2 + $0x58] sm:$0xff] }
 0x135   :  { %v940_v20 = vpop.xlane.xlu0 %939  ;;  %vm2130_vm10 = vmand %vm2723_vm9, %vm366_vm5  ;;  %2740 = vst [vmem:[#allocation16_spill] sm:$0xff] %v2191_v35 }
 0x136   :  { %v961_v22 = vadd.f32 %v940_v20, %v913_v13  ;;  %v515_v31 = vsel %vm2130_vm10, %v2044_v5, -1e+30  ;;  %vm2731_vm5 = vmmov %vm2721_vm3 }
 0x137   :  { %530 = vmax.xlane.f32.xlu1 %v508_v4  ;;  %v2147_v4 = vld [vmem:[#allocation2 + $0x50] sm:$0xff]  ;;  %vm2734_vm9 = vmmov %vm2721_vm3 }
 0x138   :  { %977 = vst.msk [vmem:[#allocation4 + $0x50] sm:$0xff] %vm2721_vm3, %v961_v22  ;;  %2730 = vst [vmem:[#allocation10_spill] sm:$0xff] %v2147_v4 }
 0x13b   :  { %546 = vmax.xlane.f32.xlu1 %v516_v16 }
 0x13f   :  { %445 = vperm.xlu0 %1458, %v399_v25   ;;  %526 = vmax.xlane.f32.xlu1 %v506_v30  ;;  %v2161_v30 = vld [vmem:[#allocation2 + $0x40] sm:$0xff] }
 0x140   :  { %2733 = vst [vmem:[#allocation12_spill] sm:$0xff] %v2161_v30 }
 0x143   :  { %542 = vmax.xlane.f32.xlu1 %v514_v40 }
 0x147   :  { %528 = vmax.xlane.f32.xlu1 %v507_v43  ;;  %v2169_v43 = vld [vmem:[#allocation2 + $0x38] sm:$0xff] }
 0x148   :  { %2735 = vst [vmem:[#allocation13_spill] sm:$0xff] %v2169_v43 }
 0x14b   :  { %544 = vmax.xlane.f32.xlu1 %v515_v31 }
 0x1a4   :  { %v523_v55 = vpop.xlane.xlu1 %522 }
 0x1a5   :  { %v2142_v44 = vmax.f32 %v2137_v47, %v523_v55  ;;  %v519_v0 = vpop.xlane.xlu0 %518 }
 0x1a6   :  { %v2145_v32 = vmax.f32 %v2139_v49, %v519_v0  ;;  %v2174_v0 = vld [vmem:[#allocation2 + $0x18] sm:$0xff]  ;;  %v2285_v49 = vld [vmem:[#allocation2 + $0x28] sm:$0xff] }
 0x1a7   :  { %2728 = vst [vmem:[#allocation8_spill] sm:$0xff] %v2142_v44  ;;  %857 = vst.msk [vmem:[#allocation2 + $0x10] sm:$0xff] %vm2721_vm3, %v2142_v44  ;;  %626 = vperm.xlu1 %1459, %v2142_v44  }
 0x1a8   :  { %2729 = vst [vmem:[#allocation9_spill] sm:$0xff] %v2145_v32  ;;  %855 = vst.msk [vmem:[#allocation2] sm:$0xff] %vm2731_vm5, %v2145_v32  ;;  %v539_v16 = vpop.xlane.xlu1 %538 }
 0x1a9   :  { %v2159_v20 = vmax.f32 %v2147_v4, %v539_v16  ;;  %v1016_v22 = vpop.xlane.xlu0 %1015  ;;  %2736 = vst [vmem:[#allocation14_spill] sm:$0xff] %v2174_v0  ;;  %vm2737_vm5 = vmmov %vm2721_vm3  ;;  %v2294_v4 = vld [vmem:[#allocation2 + $0x68] sm:$0xff] }
 0x1aa   :  { %v1047_v25 = vadd.f32 %v1016_v22, %v983_v12  ;;  %2760 = vst [vmem:[#allocation25_spill] sm:$0xff] %v2285_v49  ;;  %2763 = vst [vmem:[#allocation27_spill] sm:$0xff] %v2294_v4 }
 0x1ab   :  { %2732 = vst [vmem:[#allocation11_spill] sm:$0xff] %v2159_v20  ;;  %865 = vst.msk [vmem:[#allocation2 + $0x50] sm:$0xff] %vm2734_vm9, %v2159_v20  ;;  %666 = vperm.xlu1 %1459, %v2159_v20  }
 0x1ac   :  { %1063 = vst.msk [vmem:[#allocation5] sm:$0xff] %vm2721_vm3, %v1047_v25  ;;  %v535_v40 = vpop.xlane.xlu1 %534  ;;  %v2184_v25 = vld [vmem:[#allocation2 + $0x78] sm:$0xff]  ;;  %vm2739_vm9 = vmmov %vm2721_vm3 }
 0x1ad   :  { %v2172_v31 = vmax.f32 %v2161_v30, %v535_v40  ;;  %2738 = vst [vmem:[#allocation15_spill] sm:$0xff] %v2184_v25  ;;  %v2205_v30 = vld [vmem:[#allocation2 + $0x8] sm:$0xff] }
 0x1ae   :  { %v533_v55 = vpop.xlane.xlu0 %532  ;;  %2743 = vst [vmem:[#allocation18_spill] sm:$0xff] %v2205_v30 }
 0x1af   :  { %863 = vst.msk [vmem:[#allocation2 + $0x40] sm:$0xff] %vm2737_vm5, %v2172_v31  ;;  %v2181_v16 = vmax.f32 %v2169_v43, %v533_v55  ;;  %616 = vperm.xlu1 %1459, %v2145_v32   ;;  %vm2741_vm5 = vmmov %vm2721_vm3  ;;  %v2807_v32 = vld [vmem:[#allocation8_spill] sm:$0xff] }
 0x1b0   :  { %v525_v22 = vpop.xlane.xlu1 %524 }
 0x1b1   :  { %862 = vst.msk [vmem:[#allocation2 + $0x38] sm:$0xff] %vm2739_vm9, %v2181_v16  ;;  %v2189_v40 = vmax.f32 %v2174_v0, %v525_v22  ;;  %vm2744_vm9 = vmmov %vm2721_vm3 }
 0x1b2   :  { %v549_v13 = vpop.xlane.xlu0 %548 }
 0x1b3   :  { %858 = vst.msk [vmem:[#allocation2 + $0x18] sm:$0xff] %vm2721_vm3, %v2189_v40  ;;  %v2198_v55 = vmax.f32 %v2184_v25, %v549_v13 }
 0x1b4   :  { %v541_v54 = vpop.xlane.xlu1 %540 }
 0x1b5   :  { %870 = vst.msk [vmem:[#allocation2 + $0x78] sm:$0xff] %vm2741_vm5, %v2198_v55  ;;  %v2203_v22 = vmax.f32 %v2191_v35, %v541_v54  ;;  %v2216_v54 = vld [vmem:[#allocation2 + $0x48] sm:$0xff]  ;;  %vm2747_vm5 = vmmov %vm2721_vm3 }
 0x1b6   :  { %v944_v43 = vpop.xlane.xlu0 %943  ;;  %2746 = vst [vmem:[#allocation20_spill] sm:$0xff] %v2216_v54 }
 0x1b7   :  { %2742 = vst [vmem:[#allocation17_spill] sm:$0xff] %v2203_v22  ;;  %866 = vst.msk [vmem:[#allocation2 + $0x58] sm:$0xff] %vm2744_vm9, %v2203_v22  ;;  %v963_v0 = vadd.f32 %v944_v43, %v915_v46  ;;  %671 = vperm.xlu0 %1458, %v2203_v22   ;;  %v984_v22 = vld [vmem:[#allocation5 + $0x8] sm:$0xff] }
 0x1b8   :  { %v521_v13 = vpop.xlane.xlu1 %520  ;;  %vm2749_vm9 = vmmov %vm2721_vm3 }
 0x1b9   :  { %979 = vst.msk [vmem:[#allocation4 + $0x60] sm:$0xff] %vm2721_vm3, %v963_v0  ;;  %v2214_v25 = vmax.f32 %v2205_v30, %v521_v13  ;;  %v2241_v0 = vld [vmem:[#allocation2 + $0x30] sm:$0xff]  ;;  %vm2753_vm12 = vmmov %vm2749_vm9 }
 0x1ba   :  { %2752 = vst [vmem:[#allocation22_spill] sm:$0xff] %v2241_v0 }
 0x1bb   :  { %2745 = vst [vmem:[#allocation19_spill] sm:$0xff] %v2214_v25  ;;  %856 = vst.msk [vmem:[#allocation2 + $0x8] sm:$0xff] %vm2747_vm5, %v2214_v25  ;;  %621 = vperm.xlu0 %1458, %v2214_v25   ;;  %v2256_v25 = vld [vmem:[#allocation2 + $0x20] sm:$0xff] }
 0x1bc   :  { %v537_v12 = vpop.xlane.xlu1 %536  ;;  %2755 = vst [vmem:[#allocation24_spill] sm:$0xff] %v2256_v25 }
 0x1bd   :  { %v2224_v46 = vmax.f32 %v2216_v54, %v537_v12 }
 0x1be   :  { %v446_v43 = vpop.permute.xlu0 %445 }
 0x1bf   :  { %2748 = vst [vmem:[#allocation21_spill] sm:$0xff] %v2224_v46  ;;  %864 = vst.msk [vmem:[#allocation2 + $0x48] sm:$0xff] %vm2749_vm9, %v2224_v46  ;;  %vm468_vm3 = vcmp.eq.s32.totalorder %v446_v43, %v1678_v37  ;;  %661 = vperm.xlu0 %1458, %v2224_v46   ;;  %v2247_v46 = vld [vmem:[#allocation2 + $0x70] sm:$0xff] }
 0x1c0   :  { %v1018_v13 = vpop.xlane.xlu1 %1017  ;;  %vm2234_vm5 = vmand %vm468_vm3, %vm2104_vm2  ;;  %2754 = vst [vmem:[#allocation23_spill] sm:$0xff] %v2247_v46  ;;  %vm465_vm3 = vcmp.eq.s32.totalorder %v2047_v8, %v1678_v37 }
 0x1c1   :  { %v1048_v12 = vadd.f32 %v1018_v13, %v984_v22  ;;  %vm2275_vm14 = vmand %vm465_vm3, %vm2064_vm15 }
 0x1c2   :  { %vm2764_vm3 = vmmov %vm2749_vm9 }
 0x1c3   :  { %1064 = vst.msk [vmem:[#allocation5 + $0x8] sm:$0xff] %vm2753_vm12, %v1048_v12  ;;  %vm2756_vm12 = vmmov %vm2749_vm9 }
 0x1c4   :  { %v531_v54 = vpop.xlane.xlu1 %530 }
 0x1c5   :  { %v2245_v43 = vmax.f32 %v2241_v0, %v531_v54  ;;  %v2267_v0 = vld [vmem:[#allocation2 + $0x60] sm:$0xff] }
 0x1c7   :  { %861 = vst.msk [vmem:[#allocation2 + $0x30] sm:$0xff] %vm2749_vm9, %v2245_v43 }
 0x1c8   :  { %v547_v22 = vpop.xlane.xlu1 %546 }
 0x1c9   :  { %v2254_v13 = vmax.f32 %v2247_v46, %v547_v22 }
 0x1cb   :  { %869 = vst.msk [vmem:[#allocation2 + $0x70] sm:$0xff] %vm2756_vm12, %v2254_v13  ;;  %vm2761_vm12 = vmmov %vm2749_vm9 }
 0x1cc   :  { %v527_v54 = vpop.xlane.xlu1 %526 }
 0x1cd   :  { %v2265_v30 = vmax.f32 %v2256_v25, %v527_v54  ;;  %v2759_v54 = vmov 0.0  }
 0x1ce   :  { %v1386_v35 = vsel %vm2275_vm14, 1.0, %v2759_v54 }
 0x1cf   :  { %859 = vst.msk [vmem:[#allocation2 + $0x20] sm:$0xff] %vm2749_vm9, %v2265_v30  ;;  %vm2766_vm9 = vmmov %vm2764_vm3 }
 0x1d0   :  { %v543_v46 = vpop.xlane.xlu1 %542 }
 0x1d1   :  { %v2280_v8 = vmax.f32 %v2267_v0, %v543_v46  ;;  %v400_v46 = vld [vmem:[%s2604_s2 + $0x78] sm:$0xff] }
 0x1d3   :  { %867 = vst.msk [vmem:[#allocation2 + $0x60] sm:$0xff] %vm2761_vm12, %v2280_v8  ;;  %941 = vadd.xlane.f32.xlu1 %v1386_v35  ;;  %v1389_v35 = vsel %vm2234_vm5, 1.0, %v2759_v54  ;;  %vm2767_vm12 = vnez %v2667_v53  ;;  %v1005_v53 = vsel %vm1814_vm13, %v2016_v50, 0.0  ;;  %vm2769_vm13 = vmmov %vm2766_vm9 }
 0x1d4   :  { %v529_v25 = vpop.xlane.xlu1 %528  ;;  %1340 = vst.msk [vmem:[%s2606_s4 + $0x10] sm:$0xff] %vm2769_vm13, %v2759_v54 }
 0x1d5   :  { %v2292_v20 = vmax.f32 %v2285_v49, %v529_v25  ;;  %v1001_v25 = vsel %vm2767_vm12, %v1985_v26, 0.0 }
 0x1d7   :  { %2762 = vst [vmem:[#allocation26_spill] sm:$0xff] %v2292_v20  ;;  %860 = vst.msk [vmem:[#allocation2 + $0x28] sm:$0xff] %vm2764_vm3, %v2292_v20  ;;  %vm2768_vm3 = vnez %v2677_v1 }
 0x1d8   :  { %v545_v44 = vpop.xlane.xlu1 %544  ;;  %v1003_v22 = vsel %vm2768_vm3, %v2021_v56, 0.0 }
 0x1d9   :  { %v2301_v47 = vmax.f32 %v2294_v4, %v545_v44  ;;  %v398_v44 = vld [vmem:[%s2604_s2 + $0x68] sm:$0xff] }
 0x1db   :  { %2765 = vst [vmem:[#allocation28_spill] sm:$0xff] %v2301_v47  ;;  %868 = vst.msk [vmem:[#allocation2 + $0x68] sm:$0xff] %vm2766_vm9, %v2301_v47 }
 0x1de   :  { %947 = vadd.xlane.f32.xlu0 %v1389_v35 }
 0x1e2   :  { %1019 = vadd.xlane.f32.xlu0 %v1001_v25 }
 0x1e4   :  { %442 = vperm.xlu1 %1459, %v398_v44  }
 0x1e6   :  { %1023 = vadd.xlane.f32.xlu0 %v1003_v22 }
 0x1e8   :  { %448 = vperm.xlu1 %1459, %v400_v46  }
 0x1ea   :  { %1027 = vadd.xlane.f32.xlu0 %v1005_v53 }
 0x1ec   :  { %656 = vperm.xlu1 %1459, %v2172_v31  }
 0x1f0   :  { %631 = vperm.xlu1 %1459, %v2189_v40  }
 0x1f4   :  { %646 = vperm.xlu1 %1459, %v2245_v43  }
 0x1f8   :  { %686 = vperm.xlu1 %1459, %v2254_v13  }
 0x1fc   :  { %636 = vperm.xlu1 %1459, %v2265_v30  }
 0x200   :  { %651 = vperm.xlu0 %1458, %v2181_v16   ;;  %676 = vperm.xlu1 %1459, %v2280_v8  }
 0x204   :  { %691 = vperm.xlu0 %1458, %v2198_v55  }
 0x208   :  { %641 = vperm.xlu0 %1458, %v2292_v20  }
 0x20c   :  { %681 = vperm.xlu0 %1458, %v2301_v47  }
 0x226   :  { %v627_v1 = vpop.permute.xlu1 %626 }
 0x227   :  { %v696_v10 = vsub.f32 %v1985_v26, %v627_v1 }
 0x229   :  { %v714_v22 = vmul.f32 1.442695, %v696_v10 }
 0x22a   :  { %v667_v46 = vpop.permute.xlu1 %666 }
 0x22b   :  { %1476 = vpow2.f32 %v714_v22  ;;  %v704_v35 = vsub.f32 %v1987_v27, %v667_v46 }
 0x22d   :  { %v730_v25 = vmul.f32 1.442695, %v704_v35  ;;  %v917_v35 = vld [vmem:[#allocation4 + $0x70] sm:$0xff] }
 0x22e   :  { %v617_v44 = vpop.permute.xlu1 %616 }
 0x22f   :  { %1478 = vpow2.f32 %v730_v25  ;;  %v694_v53 = vsub.f32 %v1989_v28, %v617_v44  ;;  %v1007_v28 = vsel %vm1847_vm6, %v1991_v29, 0.0  ;;  %v760_v25 = vld [vmem:[#allocation3 + $0x10] sm:$0xff] }
 0x231   :  { %v710_v4 = vmul.f32 1.442695, %v694_v53 }
 0x233   :  { %1480 = vpow2.f32 %v710_v4 }
 0x235   :  { %v1477_v49 = vpop.eup %1476 }
 0x236   :  { %v744_v20 = vsel %vm1697_vm8, %v1477_v49, 0.0  ;;  %vm2770_vm8 = vmmov %vm2766_vm9  ;;  %v672_v38 = vpop.permute.xlu0 %671 }
 0x237   :  { %794 = vadd.xlane.f32.xlu0 %v744_v20  ;;  %1341 = vst.msk [vmem:[%s2606_s4 + $0x18] sm:$0xff] %vm2770_vm8, %v2759_v54 }
 0x239   :  { %v1479_v47 = vpop.eup %1478 }
 0x23a   :  { %v752_v26 = vsel %vm1841_vm7, %v1479_v47, 0.0  ;;  %v622_v18 = vpop.permute.xlu0 %621 }
 0x23b   :  { %810 = vadd.xlane.f32.xlu0 %v752_v26 }
 0x23d   :  { %v1481_v1 = vpop.eup %1480 }
 0x23e   :  { %v742_v10 = vsel %vm1683_vm4, %v1481_v1, 0.0  ;;  %vm2771_vm4 = vmmov %vm2770_vm8  ;;  %v2425_v20 = vpop.permute.xlu0 %661 }
 0x23f   :  { %790 = vadd.xlane.f32.xlu0 %v742_v10  ;;  %1342 = vst.msk [vmem:[%s2606_s4 + $0x20] sm:$0xff] %vm2771_vm4, %v2759_v54  ;;  %vm2772_vm7 = vmmov %vm2771_vm4 }
 0x240   :  { %1343 = vst.msk [vmem:[%s2606_s4 + $0x28] sm:$0xff] %vm2772_vm7, %v2759_v54  ;;  %vm2773_vm6 = vmmov %vm2771_vm4 }
 0x241   :  { %1344 = vst.msk [vmem:[%s2606_s4 + $0x30] sm:$0xff] %vm2773_vm6, %v2759_v54  ;;  %vm2774_vm9 = vmmov %vm2771_vm4 }
 0x242   :  { %1345 = vst.msk [vmem:[%s2606_s4 + $0x38] sm:$0xff] %vm2774_vm9, %v2759_v54  ;;  %vm2775_vm12 = vmmov %vm2771_vm4 }
 0x243   :  { %1031 = vadd.xlane.f32.xlu0 %v1007_v28  ;;  %1346 = vst.msk [vmem:[%s2606_s4 + $0x40] sm:$0xff] %vm2775_vm12, %v2759_v54  ;;  %vm2776_vm3 = vmmov %vm2771_vm4  ;;  %v985_v28 = vld [vmem:[#allocation5 + $0x10] sm:$0xff] }
 0x244   :  { %1347 = vst.msk [vmem:[%s2606_s4 + $0x48] sm:$0xff] %vm2776_vm3, %v2759_v54  ;;  %vm2777_vm13 = vmmov %vm2776_vm3 }
 0x245   :  { %1348 = vst.msk [vmem:[%s2606_s4 + $0x50] sm:$0xff] %vm2777_vm13, %v2759_v54  ;;  %vm2778_vm8 = vmmov %vm2776_vm3 }
 0x246   :  { %1349 = vst.msk [vmem:[%s2606_s4 + $0x58] sm:$0xff] %vm2778_vm8, %v2759_v54  ;;  %vm2779_vm4 = vmmov %vm2776_vm3 }
 0x247   :  { %1350 = vst.msk [vmem:[%s2606_s4 + $0x60] sm:$0xff] %vm2779_vm4, %v2759_v54  ;;  %vm2780_vm7 = vmmov %vm2776_vm3 }
 0x248   :  { %1351 = vst.msk [vmem:[%s2606_s4 + $0x68] sm:$0xff] %vm2780_vm7, %v2759_v54  ;;  %vm2781_vm6 = vmmov %vm2776_vm3 }
 0x249   :  { %1352 = vst.msk [vmem:[%s2606_s4 + $0x70] sm:$0xff] %vm2781_vm6, %v2759_v54  ;;  %vm2782_vm9 = vmmov %vm2776_vm3 }
 0x24a   :  { %1353 = vst.msk [vmem:[%s2606_s4 + $0x78] sm:$0xff] %vm2782_vm9, %v2759_v54  ;;  %vm2783_vm12 = vmmov %vm2776_vm3 }
 0x24b   :  { %vm2788_vm7 = vmmov %vm2781_vm6  ;;  %vm2789_vm6 = vnez %v2671_v57 }
 0x24c   :  { %vm2790_vm9 = vmmov %vm2788_vm7 }
 0x260   :  { %v942_v17 = vpop.xlane.xlu1 %941 }
 0x261   :  { %v962_v47 = vadd.f32 %v942_v17, %v914_v42  ;;  %v705_v42 = vsub.f32 %v1996_v33, %v672_v38 }
 0x263   :  { %978 = vst.msk [vmem:[#allocation4 + $0x58] sm:$0xff] %vm2783_vm12, %v962_v47  ;;  %vm2791_vm12 = vnez %v2679_v3 }
 0x264   :  { %v443_v49 = vpop.permute.xlu1 %442 }
 0x265   :  { %vm467_vm3 = vcmp.eq.s32.totalorder %v443_v49, %v1678_v37 }
 0x266   :  { %vm2421_vm13 = vmand %vm467_vm3, %vm2130_vm10 }
 0x267   :  { %v1388_v22 = vsel %vm2421_vm13, 1.0, %v2759_v54  ;;  %vm2792_vm3 = vmmov %vm2788_vm7 }
 0x268   :  { %945 = vadd.xlane.f32.xlu1 %v1388_v22  ;;  %v449_v46 = vpop.permute.xlu1 %448 }
 0x269   :  { %vm469_vm8 = vcmp.eq.s32.totalorder %v449_v46, %v1678_v37 }
 0x26a   :  { %vm2433_vm4 = vmand %vm469_vm8, %vm2034_vm11  ;;  %vm2793_vm8 = vnez %v2688_v11 }
 0x26b   :  { %v948_v44 = vpop.xlane.xlu0 %947  ;;  %v1390_v53 = vsel %vm2433_vm4, 1.0, %v2759_v54  ;;  %v1014_v26 = vsel %vm2433_vm4, %v2030_v60, 0.0  ;;  %v1002_v54 = vsel %vm2789_vm6, %v1998_v34, 0.0  ;;  %vm2795_vm6 = vnez %v2684_v9 }
 0x26c   :  { %v965_v1 = vadd.f32 %v948_v44, %v917_v35  ;;  %949 = vadd.xlane.f32.xlu1 %v1390_v53  ;;  %v657_v10 = vpop.permute.xlu1 %656  ;;  %v987_v35 = vld [vmem:[#allocation5 + $0x20] sm:$0xff]  ;;  %v732_v44 = vmul.f32 1.442695, %v705_v42  ;;  %v1006_v42 = vsel %vm2793_vm8, %v2028_v59, 0.0  ;;  %v703_v9 = vsub.f32 %v2003_v36, %v2425_v20 }
 0x26d   :  { %v702_v37 = vsub.f32 %v1991_v29, %v657_v10  ;;  %v695_v29 = vsub.f32 %v2005_v39, %v622_v18 }
 0x26e   :  { %981 = vst.msk [vmem:[#allocation4 + $0x70] sm:$0xff] %vm2788_vm7, %v965_v1  ;;  %v1004_v1 = vsel %vm2791_vm12, %v2039_v2, 0.0  ;;  %vm2794_vm7 = vmmov %vm2792_vm3  ;;  %vm2797_vm12 = vnez %v2663_v48 }
 0x26f   :  { %v726_v17 = vmul.f32 1.442695, %v702_v37  ;;  %v1020_v47 = vpop.xlane.xlu0 %1019 }
 0x270   :  { %v1049_v49 = vadd.f32 %v1020_v47, %v985_v28  ;;  %1021 = vadd.xlane.f32.xlu1 %v1002_v54  ;;  %v632_v22 = vpop.permute.xlu1 %631  ;;  %v989_v28 = vld [vmem:[#allocation5 + $0x30] sm:$0xff] }
 0x271   :  { %1482 = vpow2.f32 %v726_v17  ;;  %v697_v46 = vsub.f32 %v1998_v34, %v632_v22  ;;  %v712_v34 = vmul.f32 1.442695, %v695_v29 }
 0x272   :  { %1065 = vst.msk [vmem:[#allocation5 + $0x10] sm:$0xff] %vm2790_vm9, %v1049_v49  ;;  %vm2796_vm9 = vnez %v2698_v23  ;;  %v1011_v23 = vsel %vm2071_vm1, %v2023_v58, 0.0  ;;  %vm2799_vm1 = vnez %v2696_v19 }
 0x273   :  { %v716_v53 = vmul.f32 1.442695, %v697_v46  ;;  %v1024_v38 = vpop.xlane.xlu0 %1023 }
 0x274   :  { %v1051_v57 = vadd.f32 %v1024_v38, %v987_v35  ;;  %1025 = vadd.xlane.f32.xlu1 %v1004_v1  ;;  %v647_v10 = vpop.permute.xlu1 %646 }
 0x275   :  { %1484 = vpow2.f32 %v716_v53  ;;  %v700_v37 = vsub.f32 %v2016_v50, %v647_v10  ;;  %v1009_v53 = vsel %vm2796_vm9, %v1987_v27, 0.0 }
 0x276   :  { %1067 = vst.msk [vmem:[#allocation5 + $0x20] sm:$0xff] %vm2792_vm3, %v1051_v57  ;;  %1486 = vpow2.f32 %v732_v44  ;;  %vm2798_vm3 = vnez %v2657_v41 }
 0x277   :  { %v722_v39 = vmul.f32 1.442695, %v700_v37  ;;  %v1028_v18 = vpop.xlane.xlu0 %1027  ;;  %1488 = vpow2.f32 %v712_v34 }
 0x278   :  { %v1053_v17 = vadd.f32 %v1028_v18, %v989_v28  ;;  %1029 = vadd.xlane.f32.xlu1 %v1006_v42  ;;  %v687_v3 = vpop.permute.xlu1 %686  ;;  %v728_v28 = vmul.f32 1.442695, %v703_v9  ;;  %v1008_v42 = vsel %vm2799_vm1, %v2003_v36, 0.0 }
 0x279   :  { %v708_v47 = vsub.f32 %v2018_v52, %v687_v3  ;;  %1490 = vpow2.f32 %v722_v39 }
 0x27a   :  { %1069 = vst.msk [vmem:[#allocation5 + $0x30] sm:$0xff] %vm2794_vm7, %v1053_v17 }
 0x27b   :  { %v1483_v50 = vpop.eup %1482  ;;  %v738_v54 = vmul.f32 1.442695, %v708_v47  ;;  %v1010_v47 = vsel %vm2275_vm14, %v1996_v33, 0.0  ;;  %vm2802_vm14 = vnez %v2690_v15 }
 0x27c   :  { %v637_v49 = vpop.permute.xlu1 %636  ;;  %v750_v22 = vsel %vm2795_vm6, %v1483_v50, 0.0 }
 0x27d   :  { %v698_v46 = vsub.f32 %v2021_v56, %v637_v49  ;;  %806 = vadd.xlane.f32.xlu0 %v750_v22  ;;  %1492 = vpow2.f32 %v738_v54  ;;  %v1012_v54 = vsel %vm2421_vm13, %v2044_v5, 0.0  ;;  %v2803_v22 = vsel %vm2234_vm5, %v2018_v52, 0.0  ;;  %vm2817_vm5 = vmmov %vm2794_vm7 }
 0x27e   :  { %vm2805_vm13 = vnez %v2673_v61  ;;  %vm2818_vm4 = vmmov %vm2817_vm5 }
 0x27f   :  { %v1485_v11 = vpop.eup %1484  ;;  %v718_v35 = vmul.f32 1.442695, %v698_v46  ;;  %v652_v29 = vpop.permute.xlu0 %651  ;;  %vm2819_vm8 = vmmov %vm2818_vm4 }
 0x280   :  { %v677_v44 = vpop.permute.xlu1 %676  ;;  %v745_v38 = vsel %vm2797_vm12, %v1485_v11, 0.0  ;;  %v1487_v1 = vpop.eup %1486  ;;  %v701_v34 = vsub.f32 %v2028_v59, %v652_v29  ;;  %v2809_v29 = vld [vmem:[#allocation10_spill] sm:$0xff]  ;;  %vm2825_vm6 = vmmov %vm2818_vm4 }
 0x281   :  { %v706_v57 = vsub.f32 %v2023_v58, %v677_v44  ;;  %1035 = vadd.xlane.f32.xlu0 %v1009_v53  ;;  %796 = vadd.xlane.f32.xlu1 %v745_v38  ;;  %1494 = vpow2.f32 %v718_v35  ;;  %v1489_v10 = vpop.eup %1488  ;;  %v753_v48 = vsel %vm2064_vm15, %v1487_v1, 0.0  ;;  %vm2801_vm15 = vnez %v2702_v14  ;;  %v2810_v44 = vld [vmem:[#allocation11_spill] sm:$0xff]  ;;  %v2813_v1 = vld [vmem:[#allocation9_spill] sm:$0xff]  ;;  %vm2829_vm9 = vmmov %vm2818_vm4 }
 0x282   :  { %v743_v20 = vsel %vm2798_vm3, %v1489_v10, 0.0  ;;  %v724_v21 = vmul.f32 1.442695, %v701_v34  ;;  %v2811_v61 = vsub.f32 %v2809_v29, %v2810_v44  ;;  %v2812_v38 = vld [vmem:[#allocation7_spill] sm:$0xff]  ;;  %v768_v10 = vld [vmem:[#allocation3 + $0x50] sm:$0xff]  ;;  %vm2835_vm12 = vmmov %vm2818_vm4 }
 0x283   :  { %v734_v56 = vmul.f32 1.442695, %v706_v57  ;;  %v692_v37 = vpop.permute.xlu0 %691  ;;  %v1491_v27 = vpop.eup %1490  ;;  %v2814_v57 = vsub.f32 %v2812_v38, %v2813_v1  ;;  %v988_v29 = vld [vmem:[#allocation5 + $0x28] sm:$0xff]  ;;  %v2826_v44 = vld [vmem:[#allocation16_spill] sm:$0xff]  ;;  %vm2838_vm3 = vmmov %vm2818_vm4 }
 0x284   :  { %v748_v39 = vsel %vm2713_vm0, %v1491_v27, 0.0  ;;  %v709_v24 = vsub.f32 %v2030_v60, %v692_v37  ;;  %vm2800_vm0 = vnez %v2665_v51  ;;  %v602_v53 = vmul.f32 1.442695, %v2811_v61  ;;  %v2827_v61 = vld [vmem:[#allocation17_spill] sm:$0xff]  ;;  %vm2841_vm1 = vmmov %vm2838_vm3 }
 0x285   :  { %1039 = vadd.xlane.f32.xlu0 %v1011_v23  ;;  %812 = vadd.xlane.f32.xlu1 %v753_v48  ;;  %1496 = vpow2.f32 %v734_v56  ;;  %v582_v45 = vmul.f32 1.442695, %v2814_v57  ;;  %v2830_v57 = vld [vmem:[#allocation18_spill] sm:$0xff] }
 0x286   :  { %1498 = vpow2.f32 %v728_v28  ;;  %v740_v63 = vmul.f32 1.442695, %v709_v24  ;;  %v758_v28 = vld [vmem:[#allocation3] sm:$0xff] }
 0x287   :  { %v1493_v18 = vpop.eup %1492  ;;  %v642_v58 = vpop.permute.xlu0 %641  ;;  %1500 = vpow2.f32 %v724_v21 }
 0x288   :  { %v756_v59 = vsel %vm2104_vm2, %v1493_v18, 0.0  ;;  %v699_v17 = vsub.f32 %v2039_v2, %v642_v58  ;;  %1502 = vpow2.f32 %v740_v63  ;;  %vm2804_vm2 = vnez %v2682_v7  ;;  %v2806_v7 = vld [vmem:[#allocation6_spill] sm:$0xff] }
 0x289   :  { %792 = vadd.xlane.f32.xlu1 %v743_v20  ;;  %802 = vadd.xlane.f32.xlu0 %v748_v39  ;;  %v2808_v62 = vsub.f32 %v2806_v7, %v2807_v32  ;;  %v991_v58 = vld [vmem:[#allocation5 + $0x40] sm:$0xff] }
 0x28a   :  { %v720_v36 = vmul.f32 1.442695, %v699_v17 }
 0x28b   :  { %v1495_v41 = vpop.eup %1494  ;;  %v682_v3 = vpop.permute.xlu0 %681  ;;  %v586_v35 = vmul.f32 1.442695, %v2808_v62 }
 0x28c   :  { %v746_v50 = vsel %vm2800_vm0, %v1495_v41, 0.0  ;;  %v707_v6 = vsub.f32 %v2044_v5, %v682_v3  ;;  %1504 = vpow2.f32 %v720_v36  ;;  %v1082_v3 = vld [vmem:[#allocation2] sm:$0xff]  ;;  %vm2843_vm0 = vmmov %vm2841_vm1 }
 0x28d   :  { %1033 = vadd.xlane.f32.xlu1 %v1008_v42  ;;  %818 = vadd.xlane.f32.xlu0 %v756_v59  ;;  %v1178_v59 = vld [vmem:[#allocation4] sm:$0xff] }
 0x28e   :  { %v736_v51 = vmul.f32 1.442695, %v707_v6  ;;  %v1242_v41 = vadd.f32 1e-05, %v1178_v59 }
 0x28f   :  { %v1497_v19 = vpop.eup %1496 }
 0x290   :  { %v754_v2 = vsel %vm2801_vm15, %v1497_v19, 0.0  ;;  %v1499_v49 = vpop.eup %1498  ;;  %1506 = vpow2.f32 %v736_v51  ;;  %v1162_v19 = vld [vmem:[#allocation5] sm:$0xff]  ;;  %v916_v51 = vld [vmem:[#allocation4 + $0x68] sm:$0xff]  ;;  %vm2844_vm15 = vmmov %vm2843_vm0 }
 0x291   :  { %1037 = vadd.xlane.f32.xlu1 %v1010_v47  ;;  %798 = vadd.xlane.f32.xlu0 %v746_v50  ;;  %v751_v33 = vsel %vm2802_vm14, %v1499_v49, 0.0  ;;  %v1501_v12 = vpop.eup %1500  ;;  %1508 = vpow2.f32 %v586_v35  ;;  %vm2849_vm14 = vmmov %vm2843_vm0 }
 0x292   :  { %v749_v5 = vsel %vm2804_vm2, %v1501_v12, 0.0  ;;  %v1503_v14 = vpop.eup %1502  ;;  %1510 = vpow2.f32 %v602_v53  ;;  %vm2850_vm2 = vmmov %vm2843_vm0 }
 0x293   :  { %v757_v4 = vsel %vm2034_vm11, %v1503_v14, 0.0  ;;  %1512 = vpow2.f32 %v582_v45  ;;  %vm2815_vm11 = vmmov %vm2794_vm7  ;;  %v2831_v45 = vld [vmem:[#allocation19_spill] sm:$0xff] }
 0x295   :  { %1041 = vadd.xlane.f32.xlu1 %v1012_v54  ;;  %814 = vadd.xlane.f32.xlu0 %v754_v2 }
 0x296   :  { %v1505_v46 = vpop.eup %1504 }
 0x297   :  { %v747_v15 = vsel %vm2805_vm13, %v1505_v46, 0.0  ;;  %vm2852_vm13 = vmmov %vm2843_vm0 }
 0x299   :  { %808 = vadd.xlane.f32.xlu1 %v751_v33  ;;  %1043 = vadd.xlane.f32.xlu0 %v2803_v22  ;;  %v918_v22 = vld [vmem:[#allocation4 + $0x78] sm:$0xff] }
 0x29a   :  { %v1507_v11 = vpop.eup %1506 }
 0x29b   :  { %v755_v52 = vsel %vm2130_vm10, %v1507_v11, 0.0  ;;  %v1509_v9 = vpop.eup %1508  ;;  %vm2816_vm10 = vmmov %vm2794_vm7  ;;  %v986_v11 = vld [vmem:[#allocation5 + $0x18] sm:$0xff] }
 0x29c   :  { %v776_v56 = vmul.f32 %v1509_v9, %v760_v25  ;;  %v1511_v60 = vpop.eup %1510  ;;  %vm2822_vm7 = vmmov %vm2818_vm4  ;;  %v2832_v9 = vsub.f32 %v2830_v57, %v2831_v45 }
 0x29d   :  { %804 = vadd.xlane.f32.xlu1 %v749_v5  ;;  %v784_v23 = vmul.f32 %v1511_v60, %v768_v10  ;;  %v1513_v48 = vpop.eup %1512  ;;  %v2820_v5 = vld [vmem:[#allocation12_spill] sm:$0xff] }
 0x29e   :  { %v774_v20 = vmul.f32 %v1513_v48, %v758_v28  ;;  %v2821_v14 = vsub.f32 %v2820_v5, %v2172_v31  ;;  %v2828_v31 = vsub.f32 %v2826_v44, %v2827_v61  ;;  %v584_v25 = vmul.f32 1.442695, %v2832_v9  ;;  %v766_v48 = vld [vmem:[#allocation3 + $0x40] sm:$0xff] }
 0x29f   :  { %v762_v9 = vld [vmem:[#allocation3 + $0x20] sm:$0xff] }
 0x2a0   :  { %v604_v53 = vmul.f32 1.442695, %v2828_v31 }
 0x2a1   :  { %820 = vadd.xlane.f32.xlu1 %v757_v4  ;;  %v598_v4 = vmul.f32 1.442695, %v2821_v14  ;;  %v2845_v14 = vld [vmem:[#allocation13_spill] sm:$0xff] }
 0x2a5   :  { %800 = vadd.xlane.f32.xlu1 %v747_v15 }
 0x2a9   :  { %816 = vadd.xlane.f32.xlu1 %v755_v52  ;;  %v2823_v52 = vld [vmem:[#allocation14_spill] sm:$0xff] }
 0x2aa   :  { %v2824_v7 = vsub.f32 %v2823_v52, %v2189_v40  ;;  %v990_v40 = vld [vmem:[#allocation5 + $0x38] sm:$0xff] }
 0x2ac   :  { %v588_v32 = vmul.f32 1.442695, %v2824_v7 }
 0x2ad   :  { %1045 = vadd.xlane.f32.xlu1 %v1014_v26 }
 0x2c4   :  { %v795_v26 = vpop.xlane.xlu0 %794 }
 0x2c5   :  { %v824_v37 = vadd.f32 %v795_v26, %v776_v56  ;;  %v2833_v56 = vld [vmem:[#allocation22_spill] sm:$0xff] }
 0x2c6   :  { %v2834_v60 = vsub.f32 %v2833_v56, %v2245_v43 }
 0x2c7   :  { %841 = vst.msk [vmem:[#allocation3 + $0x10] sm:$0xff] %vm2815_vm11, %v824_v37  ;;  %vm2853_vm11 = vmmov %vm2843_vm0 }
 0x2c8   :  { %v811_v27 = vpop.xlane.xlu0 %810  ;;  %v594_v26 = vmul.f32 1.442695, %v2834_v60  ;;  %v994_v60 = vld [vmem:[#allocation5 + $0x58] sm:$0xff] }
 0x2c9   :  { %v832_v34 = vadd.f32 %v811_v27, %v784_v23  ;;  %v2836_v27 = vld [vmem:[#allocation23_spill] sm:$0xff] }
 0x2ca   :  { %v2837_v28 = vsub.f32 %v2836_v27, %v2254_v13 }
 0x2cb   :  { %849 = vst.msk [vmem:[#allocation3 + $0x50] sm:$0xff] %vm2816_vm10, %v832_v34  ;;  %vm2854_vm10 = vmmov %vm2843_vm0 }
 0x2cc   :  { %v791_v39 = vpop.xlane.xlu0 %790  ;;  %v610_v34 = vmul.f32 1.442695, %v2837_v28  ;;  %v2856_v28 = vld [vmem:[#allocation25_spill] sm:$0xff] }
 0x2cd   :  { %v822_v18 = vadd.f32 %v791_v39, %v774_v20 }
 0x2cf   :  { %839 = vst.msk [vmem:[#allocation3] sm:$0xff] %vm2817_vm5, %v822_v18  ;;  %vm2855_vm5 = vmmov %vm2843_vm0 }
 0x2d0   :  { %v1032_v21 = vpop.xlane.xlu0 %1031 }
 0x2d1   :  { %v1055_v24 = vadd.f32 %v1032_v21, %v991_v58  ;;  %v761_v58 = vld [vmem:[#allocation3 + $0x18] sm:$0xff]  ;;  %v2839_v21 = vld [vmem:[#allocation24_spill] sm:$0xff] }
 0x2d3   :  { %1071 = vst.msk [vmem:[#allocation5 + $0x40] sm:$0xff] %vm2818_vm4, %v1055_v24  ;;  %v2840_v24 = vsub.f32 %v2839_v21, %v2265_v30  ;;  %vm2859_vm4 = vmmov %vm2843_vm0 }
 0x2d6   :  { %v1098_v42 = vld [vmem:[#allocation3] sm:$0xff] }
 0x2d7   :  { %1514 = vlog2.f32 %v1098_v42  ;;  %v590_v42 = vmul.f32 1.442695, %v2840_v24 }
 0x2d8   :  { %1516 = vrcp.f32 %v1242_v41 }
 0x2d9   :  { %1518 = vpow2.f32 %v598_v4  ;;  %v573_v4 = vsub.f32 %v2845_v14, %v2181_v16  ;;  %v2851_v16 = vld [vmem:[#allocation15_spill] sm:$0xff]  ;;  %v773_v14 = vld [vmem:[#allocation3 + $0x78] sm:$0xff] }
 0x2da   :  { %1520 = vpow2.f32 %v588_v32  ;;  %v581_v31 = vsub.f32 %v2851_v16, %v2198_v55 }
 0x2db   :  { %1522 = vpow2.f32 %v604_v53  ;;  %v596_v61 = vmul.f32 1.442695, %v573_v4  ;;  %v992_v53 = vld [vmem:[#allocation5 + $0x48] sm:$0xff] }
 0x2dc   :  { %1524 = vpow2.f32 %v584_v25  ;;  %v612_v56 = vmul.f32 1.442695, %v581_v31 }
 0x2dd   :  { %1526 = vpow2.f32 %v594_v26 }
 0x2de   :  { %1528 = vpow2.f32 %v610_v34  ;;  %v2857_v34 = vld [vmem:[#allocation26_spill] sm:$0xff] }
 0x2df   :  { %1530 = vpow2.f32 %v590_v42 }
 0x2e1   :  { %v1515_v63 = vpop.eup %1514 }
 0x2e2   :  { %v1115_v17 = vmul.f32 0.6931472, %v1515_v63  ;;  %v1517_v54 = vpop.eup %1516 }
 0x2e3   :  { %v1519_v37 = vpop.eup %1518 }
 0x2e4   :  { %v1146_v47 = vadd.f32 %v1115_v17, %v1082_v3  ;;  %v782_v20 = vmul.f32 %v1519_v37, %v766_v48  ;;  %v1521_v39 = vpop.eup %1520  ;;  %v769_v3 = vld [vmem:[#allocation3 + $0x58] sm:$0xff] }
 0x2e5   :  { %v777_v41 = vmul.f32 %v1521_v39, %v761_v58  ;;  %v1523_v63 = vpop.eup %1522  ;;  %v996_v58 = vld [vmem:[#allocation5 + $0x68] sm:$0xff] }
 0x2e6   :  { %v1194_v50 = vmul.f32 %v1178_v59, %v1146_v47  ;;  %v993_v59 = vld [vmem:[#allocation5 + $0x50] sm:$0xff]  ;;  %v785_v30 = vmul.f32 %v1523_v63, %v769_v3 }
 0x2e7   :  { %v2862_v3 = vld [vmem:[#allocation28_spill] sm:$0xff] }
 0x2e8   :  { %v1210_v36 = vsub.f32 %v1162_v19, %v1194_v50  ;;  %v2842_v19 = vsub.f32 %v2267_v0, %v2280_v8  ;;  %v2847_v0 = vld [vmem:[#allocation21_spill] sm:$0xff] }
 0x2ea   :  { %v1226_v6 = vadd.f32 1e-05, %v1210_v36  ;;  %v606_v36 = vmul.f32 1.442695, %v2842_v19  ;;  %v997_v19 = vld [vmem:[#allocation5 + $0x70] sm:$0xff] }
 0x2ec   :  { %v1259_v2 = vmul.f32 %v1517_v54, %v1226_v6  ;;  %v995_v6 = vld [vmem:[#allocation5 + $0x60] sm:$0xff]  ;;  %v1525_v54 = vpop.eup %1524  ;;  %1532 = vpow2.f32 %v606_v36 }
 0x2ee   :  { %v1290_v49 = vmul.f32 -1.0, %v1259_v2  ;;  %v1527_v2 = vpop.eup %1526 }
 0x2ef   :  { %v1529_v7 = vpop.eup %1528 }
 0x2f0   :  { %1338 = vst.msk [vmem:[%s2606_s4] sm:$0xff] %vm2819_vm8, %v1290_v49  ;;  %vm2860_vm8 = vmmov %vm2843_vm0 }
 0x2f5   :  { %v946_v33 = vpop.xlane.xlu1 %945 }
 0x2f6   :  { %v964_v12 = vadd.f32 %v946_v33, %v916_v51  ;;  %v764_v33 = vld [vmem:[#allocation3 + $0x30] sm:$0xff] }
 0x2f8   :  { %980 = vst.msk [vmem:[#allocation4 + $0x68] sm:$0xff] %vm2822_vm7, %v964_v12  ;;  %v759_v12 = vld [vmem:[#allocation3 + $0x8] sm:$0xff]  ;;  %vm2864_vm7 = vmmov %vm2843_vm0 }
 0x2f9   :  { %v950_v46 = vpop.xlane.xlu1 %949  ;;  %v775_v52 = vmul.f32 %v1525_v54, %v759_v12 }
 0x2fa   :  { %v966_v15 = vadd.f32 %v950_v46, %v918_v22  ;;  %v2846_v46 = vld [vmem:[#allocation20_spill] sm:$0xff] }
 0x2fb   :  { %v2848_v8 = vsub.f32 %v2846_v46, %v2847_v0 }
 0x2fc   :  { %982 = vst.msk [vmem:[#allocation4 + $0x78] sm:$0xff] %vm2825_vm6, %v966_v15  ;;  %vm2865_vm6 = vmmov %vm2843_vm0 }
 0x2fd   :  { %v1022_v62 = vpop.xlane.xlu1 %1021  ;;  %v600_v15 = vmul.f32 1.442695, %v2848_v8  ;;  %v1083_v8 = vld [vmem:[#allocation2 + $0x8] sm:$0xff] }
 0x2fe   :  { %v1050_v35 = vadd.f32 %v1022_v62, %v986_v11  ;;  %v780_v11 = vmul.f32 %v1527_v2, %v764_v33  ;;  %v765_v2 = vld [vmem:[#allocation3 + $0x38] sm:$0xff] }
 0x2ff   :  { %1534 = vpow2.f32 %v600_v15 }
 0x300   :  { %1066 = vst.msk [vmem:[#allocation5 + $0x18] sm:$0xff] %vm2829_vm9, %v1050_v35  ;;  %v772_v35 = vld [vmem:[#allocation3 + $0x70] sm:$0xff]  ;;  %1536 = vpow2.f32 %v596_v61  ;;  %vm2866_vm9 = vmmov %vm2843_vm0 }
 0x301   :  { %v1026_v38 = vpop.xlane.xlu1 %1025  ;;  %1538 = vpow2.f32 %v612_v56 }
 0x302   :  { %v1052_v1 = vadd.f32 %v1026_v38, %v988_v29  ;;  %v788_v38 = vmul.f32 %v1529_v7, %v772_v35 }
 0x304   :  { %1068 = vst.msk [vmem:[#allocation5 + $0x28] sm:$0xff] %vm2835_vm12, %v1052_v1  ;;  %v1531_v1 = vpop.eup %1530  ;;  %vm2867_vm12 = vmmov %vm2843_vm0 }
 0x305   :  { %v1030_v10 = vpop.xlane.xlu1 %1029  ;;  %v778_v55 = vmul.f32 %v1531_v1, %v762_v9  ;;  %v1533_v26 = vpop.eup %1532 }
 0x306   :  { %v1054_v23 = vadd.f32 %v1030_v10, %v990_v40 }
 0x308   :  { %1070 = vst.msk [vmem:[#allocation5 + $0x38] sm:$0xff] %vm2838_vm3, %v1054_v23  ;;  %v770_v23 = vld [vmem:[#allocation3 + $0x60] sm:$0xff]  ;;  %vm2868_vm3 = vmmov %vm2843_vm0 }
 0x309   :  { %v1535_v21 = vpop.eup %1534 }
 0x30a   :  { %v807_v18 = vpop.xlane.xlu0 %806 }
 0x30b   :  { %v830_v43 = vadd.f32 %v807_v18, %v782_v20  ;;  %v2858_v20 = vsub.f32 %v2856_v28, %v2857_v34 }
 0x30d   :  { %847 = vst.msk [vmem:[#allocation3 + $0x40] sm:$0xff] %vm2841_vm1, %v830_v43  ;;  %v592_v39 = vmul.f32 1.442695, %v2858_v20  ;;  %v786_v43 = vmul.f32 %v1533_v26, %v770_v23  ;;  %vm2869_vm1 = vmmov %vm2843_vm0 }
 0x30e   :  { %v1036_v17 = vpop.xlane.xlu0 %1035  ;;  %v797_v13 = vpop.xlane.xlu1 %796 }
 0x30f   :  { %v1057_v47 = vadd.f32 %v1036_v17, %v993_v59  ;;  %v825_v50 = vadd.f32 %v797_v13, %v777_v41  ;;  %v767_v59 = vld [vmem:[#allocation3 + $0x48] sm:$0xff] }
 0x310   :  { %v1179_v17 = vld [vmem:[#allocation4 + $0x8] sm:$0xff]  ;;  %v783_v36 = vmul.f32 %v1535_v21, %v767_v59 }
 0x311   :  { %1073 = vst.msk [vmem:[#allocation5 + $0x50] sm:$0xff] %vm2843_vm0, %v1057_v47  ;;  %v2861_v13 = vld [vmem:[#allocation27_spill] sm:$0xff] }
 0x312   :  { %842 = vst.msk [vmem:[#allocation3 + $0x18] sm:$0xff] %vm2844_vm15, %v825_v50  ;;  %v1040_v49 = vpop.xlane.xlu0 %1039  ;;  %v813_v51 = vpop.xlane.xlu1 %812  ;;  %v2863_v47 = vsub.f32 %v2861_v13, %v2862_v3  ;;  %vm2870_vm15 = vmmov %vm2843_vm0 }
 0x313   :  { %v1059_v22 = vadd.f32 %v1040_v49, %v995_v6  ;;  %v833_v5 = vadd.f32 %v813_v51, %v785_v30  ;;  %v1537_v6 = vpop.eup %1536  ;;  %v1243_v49 = vadd.f32 1e-05, %v1179_v17 }
 0x314   :  { %v608_v50 = vmul.f32 1.442695, %v2863_v47  ;;  %v781_v12 = vmul.f32 %v1537_v6, %v765_v2 }
 0x315   :  { %1075 = vst.msk [vmem:[#allocation5 + $0x60] sm:$0xff] %vm2849_vm14, %v1059_v22  ;;  %v1539_v22 = vpop.eup %1538  ;;  %vm2871_vm14 = vmmov %vm2843_vm0 }
 0x316   :  { %850 = vst.msk [vmem:[#allocation3 + $0x58] sm:$0xff] %vm2850_vm2, %v833_v5  ;;  %v803_v32 = vpop.xlane.xlu0 %802  ;;  %v793_v62 = vpop.xlane.xlu1 %792  ;;  %v789_v15 = vmul.f32 %v1539_v22, %v773_v14  ;;  %vm2872_vm2 = vmmov %vm2843_vm0 }
 0x317   :  { %v828_v29 = vadd.f32 %v803_v32, %v780_v11  ;;  %v823_v44 = vadd.f32 %v793_v62, %v775_v52  ;;  %v763_v32 = vld [vmem:[#allocation3 + $0x28] sm:$0xff] }
 0x319   :  { %845 = vst.msk [vmem:[#allocation3 + $0x30] sm:$0xff] %vm2852_vm13, %v828_v29  ;;  %v1163_v29 = vld [vmem:[#allocation5 + $0x8] sm:$0xff] }
 0x31a   :  { %840 = vst.msk [vmem:[#allocation3 + $0x8] sm:$0xff] %vm2853_vm11, %v823_v44  ;;  %v819_v57 = vpop.xlane.xlu0 %818  ;;  %v1034_v45 = vpop.xlane.xlu1 %1033 }
 0x31b   :  { %v836_v25 = vadd.f32 %v819_v57, %v788_v38  ;;  %v1056_v40 = vadd.f32 %v1034_v45, %v992_v53  ;;  %v771_v53 = vld [vmem:[#allocation3 + $0x68] sm:$0xff] }
 0x31d   :  { %853 = vst.msk [vmem:[#allocation3 + $0x70] sm:$0xff] %vm2854_vm10, %v836_v25 }
 0x31e   :  { %1072 = vst.msk [vmem:[#allocation5 + $0x48] sm:$0xff] %vm2855_vm5, %v1056_v40  ;;  %v799_v10 = vpop.xlane.xlu0 %798  ;;  %v1038_v37 = vpop.xlane.xlu1 %1037 }
 0x31f   :  { %v826_v48 = vadd.f32 %v799_v10, %v778_v55  ;;  %v1058_v27 = vadd.f32 %v1038_v37, %v994_v60  ;;  %v998_v60 = vld [vmem:[#allocation5 + $0x78] sm:$0xff] }
 0x321   :  { %v1099_v18 = vld [vmem:[#allocation3 + $0x8] sm:$0xff]  ;;  %843 = vst.msk [vmem:[#allocation3 + $0x20] sm:$0xff] %vm2859_vm4, %v826_v48 }
 0x322   :  { %1540 = vlog2.f32 %v1099_v18  ;;  %1074 = vst.msk [vmem:[#allocation5 + $0x58] sm:$0xff] %vm2860_vm8, %v1058_v27  ;;  %v815_v24 = vpop.xlane.xlu0 %814  ;;  %v1042_v42 = vpop.xlane.xlu1 %1041 }
 0x323   :  { %v834_v41 = vadd.f32 %v815_v24, %v786_v43  ;;  %v1060_v63 = vadd.f32 %v1042_v42, %v996_v58  ;;  %1542 = vpow2.f32 %v592_v39 }
 0x324   :  { %1544 = vpow2.f32 %v608_v50 }
 0x325   :  { %851 = vst.msk [vmem:[#allocation3 + $0x60] sm:$0xff] %vm2864_vm7, %v834_v41  ;;  %1546 = vrcp.f32 %v1243_v49 }
 0x326   :  { %1076 = vst.msk [vmem:[#allocation5 + $0x68] sm:$0xff] %vm2865_vm6, %v1060_v63  ;;  %v1044_v54 = vpop.xlane.xlu0 %1043  ;;  %v809_v30 = vpop.xlane.xlu1 %808 }
 0x327   :  { %v1061_v51 = vadd.f32 %v1044_v54, %v997_v19  ;;  %v831_v33 = vadd.f32 %v809_v30, %v783_v36 }
 0x329   :  { %1077 = vst.msk [vmem:[#allocation5 + $0x70] sm:$0xff] %vm2866_vm9, %v1061_v51 }
 0x32a   :  { %848 = vst.msk [vmem:[#allocation3 + $0x48] sm:$0xff] %vm2867_vm12, %v831_v33  ;;  %v805_v5 = vpop.xlane.xlu1 %804 }
 0x32b   :  { %v829_v46 = vadd.f32 %v805_v5, %v781_v12 }
 0x32c   :  { %v1541_v4 = vpop.eup %1540 }
 0x32d   :  { %v1117_v0 = vmul.f32 0.6931472, %v1541_v4  ;;  %846 = vst.msk [vmem:[#allocation3 + $0x38] sm:$0xff] %vm2868_vm3, %v829_v46  ;;  %v1543_v11 = vpop.eup %1542 }
 0x32e   :  { %v821_v7 = vpop.xlane.xlu1 %820  ;;  %v779_v44 = vmul.f32 %v1543_v11, %v763_v32  ;;  %v1545_v61 = vpop.eup %1544 }
 0x32f   :  { %v1147_v52 = vadd.f32 %v1117_v0, %v1083_v8  ;;  %v837_v62 = vadd.f32 %v821_v7, %v789_v15  ;;  %v1547_v57 = vpop.eup %1546  ;;  %v787_v45 = vmul.f32 %v1545_v61, %v771_v53 }
 0x331   :  { %v1195_v35 = vmul.f32 %v1179_v17, %v1147_v52  ;;  %854 = vst.msk [vmem:[#allocation3 + $0x78] sm:$0xff] %vm2869_vm1, %v837_v62 }
 0x332   :  { %v801_v31 = vpop.xlane.xlu1 %800 }
 0x333   :  { %v1211_v16 = vsub.f32 %v1163_v29, %v1195_v35  ;;  %v827_v38 = vadd.f32 %v801_v31, %v779_v44 }
 0x335   :  { %v1227_v1 = vadd.f32 1e-05, %v1211_v16  ;;  %844 = vst.msk [vmem:[#allocation3 + $0x28] sm:$0xff] %vm2843_vm0, %v827_v38 }
 0x336   :  { %v817_v25 = vpop.xlane.xlu1 %816 }
 0x337   :  { %v1261_v9 = vmul.f32 %v1547_v57, %v1227_v1  ;;  %v835_v40 = vadd.f32 %v817_v25, %v787_v45 }
 0x339   :  { %v1291_v56 = vmul.f32 -1.0, %v1261_v9  ;;  %852 = vst.msk [vmem:[#allocation3 + $0x68] sm:$0xff] %vm2870_vm15, %v835_v40 }
 0x33a   :  { %v1046_v55 = vpop.xlane.xlu1 %1045 }
 0x33b   :  { %1339 = vst.msk [vmem:[%s2606_s4 + $0x8] sm:$0xff] %vm2871_vm14, %v1291_v56  ;;  %v1062_v26 = vadd.f32 %v1046_v55, %v998_v60 }
 0x33d   :  { %1078 = vst.msk [vmem:[#allocation5 + $0x78] sm:$0xff] %vm2872_vm2, %v1062_v26 }

</bundles_post_ra>
